<compile_context>
chip_gen: v5e
topology: v5e:2x2
jax: 0.10.0
libtpu: 0.0.40
codegen_flags: <defaults>
</compile_context>

<pallas_src>
import numpy as np
import jax
import jax.numpy as jnp
from jax import lax
from jax.experimental import pallas as pl
from jax.experimental.pallas import tpu as pltpu

NEG_INF = -1.0e30


def _round_up(x, m):
    return -(-x // m) * m


def _hw_params():
    """(generation, mxu_rows, vmem_budget, vmem_limit, vmem_cap, split_cores)."""
    kind = ""
    try:
        kind = jax.devices()[0].device_kind.lower()
    except Exception:
        pass
    vmem_cap = None
    try:
        vmem_cap = int(pltpu.get_tpu_info().vmem_capacity_bytes)
    except Exception:
        vmem_cap = None
    if "v7" in kind:
        gen, mxu_rows = "v7x", 256
        cap = vmem_cap or (64 << 20)
        budget = min(38 << 20, int(cap * 0.60))
        limit = min(56 << 20, int(cap * 0.88))
        split = True                      # keep nb >= 2 so both TCs have work
    elif "v6" in kind:
        gen, mxu_rows = "v6e", 256
        cap = vmem_cap or (128 << 20)
        budget = min(64 << 20, int(cap * 0.50))
        limit = min(96 << 20, int(cap * 0.75))
        split = False
    elif "v5" in kind or "v4" in kind:
        gen, mxu_rows = "v5e", 128
        cap = vmem_cap or (128 << 20)
        budget = min(64 << 20, int(cap * 0.50))
        limit = min(96 << 20, int(cap * 0.75))
        split = False
    else:
        gen, mxu_rows = "unknown", 128
        cap = vmem_cap or (64 << 20)
        budget = min(28 << 20, int(cap * 0.45))
        limit = min(48 << 20, int(cap * 0.75))
        split = False
    return gen, mxu_rows, budget, limit, cap, split


def _select_tiles(B, T, U1p, V, itemsize, mxu_rows, budget, split_cores,
                  max_t_tile):
    """Pick (b_tile, t_tile) under an honest VMEM model.

    VMEM model per chunk: double-buffered native-dtype logits block plus the
    per-sub-block live temps (~3 f32-sized slabs of b_tile*SB*U1p*V elements).
    """
    def fits(bt, tt):
        sb = min(8, tt)
        logits_db = 2 * bt * tt * U1p * V * itemsize
        temps = 12 * bt * sb * U1p * V
        return logits_db + temps + (2 << 20) <= budget

    nb = max(1, -(-B // mxu_rows))
    if split_cores and B >= 16:
        nb = max(nb, 2)
    b_tile = -(-B // nb)
    while b_tile > 8 and not fits(b_tile, 1):
        nb *= 2
        b_tile = -(-B // nb)

    cap = max(1, min(max_t_tile, _round_up(T, 8)))
    cands = list(range(1, min(8, cap) + 1)) + list(range(16, cap + 1, 8))
    best = 1
    for tt in cands:
        if not fits(b_tile, tt):
            continue
        # prefer the largest tile whose T-padding waste is <= ~12.5%
        if _round_up(T, tt) - T <= max(0, T // 8) and tt > best:
            best = tt
    return b_tile, best


def _make_rnnt_kernel(SB, n_sb, t_true, mask_t, softmax_dtype):
    def kernel(tlen_ref, tgt_ref, logits_ref, out_ref, A_s):
        # tlen_ref  : (B_t, 1, 1)  int32   true target length per row
        # tgt_ref   : (B_t, U1, 1) int32   targets padded to U1p (pad never used)
        # logits_ref: (B_t, T_t, U1, V)    native-dtype chunk of joiner output
        # out_ref   : (B_t, 1, U1) f32     masked per-sequence loss row
        # A_s       : (B_t, U1)    f32     DP carry alpha[t-1,:]+blank[t-1,:]
        t_chunk = pl.program_id(1)
        n_chunks = pl.num_programs(1)
        B_t, T_t, U1, V = logits_ref.shape

        # Tiny constant cumsum matrices; rebuilding per invocation is free.
        ki = lax.broadcasted_iota(jnp.int32, (U1, U1), 0)
        ui = lax.broadcasted_iota(jnp.int32, (U1, U1), 1)
        m_incl = (ki <= ui).astype(jnp.float32)     # inclusive (lower-tri)
        m_excl = (ki < ui).astype(jnp.float32)      # exclusive

        u_iota = lax.broadcasted_iota(jnp.int32, (B_t, U1), 1)
        u_len = tlen_ref[...].reshape(B_t, 1)
        emit_valid = u_iota < u_len                 # (B_t, U1)
        tgt = tgt_ref[...].reshape(B_t, 1, U1, 1)   # broadcast against V lanes

        @pl.when(t_chunk == 0)
        def _init():
            A_s[...] = jnp.where(u_iota == 0, 0.0, NEG_INF)   # alpha[0,0] = 0

        def process(t0):
            # ---- bulk prep for SB frames (one pass over the slab) ----------
            x = logits_ref[:, pl.ds(t0, SB), :, :]            # (B_t,SB,U1,V)
            xs = x.astype(softmax_dtype)
            mx = jnp.max(xs, axis=-1, keepdims=True)
            ssum = jnp.sum(jnp.exp(xs - mx), axis=-1, dtype=jnp.float32)
            logz = mx[..., 0].astype(jnp.float32) + jnp.log(ssum)     # (B_t,SB,U1)
            # blank is a compile-time-constant lane: static slice, no one-hot.
            blank_lp = x[..., V - 1].astype(jnp.float32) - logz       # (B_t,SB,U1)
            # emit log-prob via select-and-max (no f32 one-hot product slab).
            v_iota = lax.broadcasted_iota(jnp.int32, (B_t, 1, U1, V), 3)
            neg = jnp.asarray(NEG_INF, dtype=x.dtype)
            emit_logit = jnp.max(jnp.where(tgt == v_iota, x, neg),
                                 axis=-1).astype(jnp.float32)
            # Emissions at/after the true target length are zeroed (NOT -inf).
            # This is safe only because the cumsum matrices are lower
            # triangular: those columns can never feed the u == u_len entry
            # that is read out, and zeros keep every intermediate bounded.
            emit_lp = jnp.where(emit_valid[:, None, :],
                                emit_logit - logz, 0.0)               # (B_t,SB,U1)
            # Exclusive cumsum along u for all SB frames: one bulk MXU matmul
            # (hoisted out of the serial per-frame loop).
            E = jnp.dot(emit_lp.reshape(B_t * SB, U1), m_excl,
                        preferred_element_type=jnp.float32).reshape(B_t, SB, U1)

            # ---- serial alpha recursion over these SB frames ---------------
            A = A_s[...]
            base = t_chunk * T_t + t0
            for f in range(SB):   # static unroll: keeps the chain LLO-visible
                Et = E[:, f, :]                               # (B_t,U1)
                z = A - Et
                mz = jnp.max(z, axis=-1, keepdims=True)
                # alpha[t,u] = E[u] + log sum_{k<=u} exp(A[k]-E[k])
                c = jnp.dot(jnp.exp(z - mz), m_incl,
                            preferred_element_type=jnp.float32)
                A_new = Et + mz + jnp.log(c) + blank_lp[:, f, :]
                if mask_t:
                    # Frames past the true T (wrapper padding) are identity.
                    A = jnp.where(base + f < t_true, A_new, A)
                else:
                    A = A_new
            A_s[...] = A                                      # carry forward

        if n_sb == 1:
            process(0)
        else:
            @pl.loop(0, n_sb)
            def _sub(sb):
                process(pl.multiple_of(sb * SB, SB))

        @pl.when(t_chunk == n_chunks - 1)
        def _finish():
            # loss_b = -(alpha[T-1,u_len] + blank_lp[T-1,u_len]); masked row
            # out, summed / sliced wrapper-side.
            out_ref[...] = jnp.where(u_iota == u_len, -A_s[...],
                                     0.0).reshape(B_t, 1, U1)

    return kernel


def rnnt_loss(log_probs, targets, logit_lengths, target_lengths,
              reduction="mean", max_t_tile=32):
    """Pallas forward of torchaudio.transforms.RNNTLoss (blank = last class)."""
    B, T, U1, V = log_probs.shape
    # Module forward overrides logit_lengths with the full time length T.
    del logit_lengths

    targets = targets.astype(jnp.int32)
    target_lengths = target_lengths.astype(jnp.int32)

    gen, mxu_rows, vmem_budget, vmem_limit, vmem_cap, split = _hw_params()
    itemsize = jnp.dtype(log_probs.dtype).itemsize

    # Pad the label axis to the f32 sublane granule so DP lanes / the (U1,U1)
    # cumsum matmuls are layout-clean.  (For huge U1*V the extra HBM copy of
    # the padded logits should instead be handled in-kernel.)
    U1p = _round_up(U1, 8)

    b_tile, t_tile = _select_tiles(B, T, U1p, V, itemsize, mxu_rows,
                                   vmem_budget, split, max_t_tile)
    SB = min(8, t_tile)
    assert t_tile % SB == 0
    n_sb = t_tile // SB
    B_pad = _round_up(B, b_tile)
    T_pad = _round_up(T, t_tile)
    nb, nt = B_pad // b_tile, T_pad // t_tile

    # bf16 exp/sum over V only where the VPU/EUP support bf16 natively.
    softmax_dtype = (jnp.bfloat16
                     if (log_probs.dtype == jnp.bfloat16 and gen in ("v6e", "v7x"))
                     else jnp.float32)

    # Wrapper-side padding (cheap glue; pads are masked inside the kernel).
    lp_p = log_probs
    if (B_pad, T_pad, U1p) != (B, T, U1):
        lp_p = jnp.pad(log_probs,
                       ((0, B_pad - B), (0, T_pad - T), (0, U1p - U1), (0, 0)))
    U = targets.shape[1]
    tgt_p = jnp.pad(targets, ((0, B_pad - B), (0, U1p - U))).reshape(B_pad, U1p, 1)
    tlen_p = jnp.pad(target_lengths, ((0, B_pad - B),)).reshape(B_pad, 1, 1)

    kernel = _make_rnnt_kernel(SB=SB, n_sb=n_sb, t_true=T,
                               mask_t=(T_pad != T), softmax_dtype=softmax_dtype)

    grid_spec = pltpu.PrefetchScalarGridSpec(
        num_scalar_prefetch=0,
        grid=(nb, nt),
        in_specs=[
            pl.BlockSpec((b_tile, 1, 1), lambda b, t: (b, 0, 0)),
            pl.BlockSpec((b_tile, U1p, 1), lambda b, t: (b, 0, 0)),
            pl.BlockSpec((b_tile, t_tile, U1p, V), lambda b, t: (b, t, 0, 0)),
        ],
        out_specs=pl.BlockSpec((b_tile, 1, U1p), lambda b, t: (b, 0, 0)),
        scratch_shapes=[pltpu.VMEM((b_tile, U1p), jnp.float32)],   # DP carry A
    )

    # Honest VMEM footprint estimate (double-buffered logits + live temps).
    est_bytes = (2 * b_tile * t_tile * U1p * V * itemsize
                 + 12 * b_tile * SB * U1p * V
                 + 16 * b_tile * U1p + (2 << 20))
    if est_bytes > vmem_cap:
        # TODO(synk): for very large U1*V, stream the log-softmax over V
        # chunks (running max / sum-exp) instead of refusing here.
        raise ValueError(
            f"RNNT tile footprint {est_bytes} B exceeds VMEM capacity {vmem_cap} B")
    vmem_limit = int(min(vmem_cap, max(vmem_limit, est_bytes + (8 << 20))))

    cost = pl.CostEstimate(
        flops=int(B_pad * T_pad * U1p * (6 * V + 4 * U1p)),
        transcendentals=int(B_pad * T_pad * U1p * (V + 2)),
        bytes_accessed=int(lp_p.size * itemsize + B_pad * (U1p * 8 + 8)),
    )

    out = pl.pallas_call(
        kernel,
        out_shape=jax.ShapeDtypeStruct((B_pad, 1, U1p), jnp.float32),
        grid_spec=grid_spec,
        compiler_params=pltpu.CompilerParams(
            dimension_semantics=("parallel", "arbitrary"),
            vmem_limit_bytes=vmem_limit,
        ),
        cost_estimate=cost,
    )(tlen_p, tgt_p, lp_p)          # native dtype in; upcast happens in-kernel

    per_seq = jnp.sum(out[:B], axis=(1, 2))          # (B,) per-sequence costs
    if reduction == "mean":
        return jnp.mean(per_seq)
    if reduction == "sum":
        return jnp.sum(per_seq)
    return per_seq


def _rnnt_loss_ref(log_probs, targets, target_lengths):
    """Pure numpy reference (same math torchaudio's C++ kernel computes)."""
    lp = np.asarray(jax.nn.log_softmax(log_probs, axis=-1), dtype=np.float64)
    tgts = np.asarray(targets)
    B, T, U1, V = lp.shape
    blank = V - 1
    losses = []
    for b in range(B):
        U = int(target_lengths[b])
        alpha = np.full((T, U + 1), -np.inf)
        alpha[0, 0] = 0.0
        for t in range(T):
            for u in range(U + 1):
                if t == 0 and u == 0:
                    continue
                a = alpha[t - 1, u] + lp[b, t - 1, u, blank] if t > 0 else -np.inf
                c = (alpha[t, u - 1] + lp[b, t, u - 1, tgts[b, u - 1]]
                     if u > 0 else -np.inf)
                alpha[t, u] = np.logaddexp(a, c)
        losses.append(-(alpha[T - 1, U] + lp[b, T - 1, U, blank]))
    return np.array(losses)


if __name__ == "__main__":
    # Small shapes consistent with the module's forward:
    #   log_probs: (B, T, U+1, V), targets: (B, U), lengths: (B,)
    B, T, U, V = 2, 16, 4, 16
    U1 = U + 1

    key = jax.random.PRNGKey(0)
    k1, k2 = jax.random.split(key)
    log_probs = jax.random.normal(k1, (B, T, U1, V), dtype=jnp.float32)
    targets = jax.random.randint(k2, (B, U), 0, V - 1, dtype=jnp.int32)
    logit_lengths = jnp.full((B,), T, dtype=jnp.int32)   # ignored (module overrides)
    target_lengths = jnp.array([U, U - 1], dtype=jnp.int32)

    ref_mean = float(np.mean(_rnnt_loss_ref(np.asarray(log_probs),
                                            np.asarray(targets),
                                            np.asarray(target_lengths))))

    # 1) Default path: single time chunk, sub-block loop (n_sb > 1).
    loss1 = jax.block_until_ready(
        rnnt_loss(log_probs, targets, logit_lengths, target_lengths))
    assert np.allclose(float(loss1), ref_mean, rtol=1e-4, atol=1e-4), (float(loss1), ref_mean)

    # 2) Multi time-chunk path (T tiled into 4 chunks): exercises the alpha
    #    carry across the "arbitrary" grid axis and the init/finish guards.
    loss2 = jax.block_until_ready(
        rnnt_loss(log_probs, targets, logit_lengths, target_lengths, max_t_tile=4))
    assert np.allclose(float(loss2), ref_mean, rtol=1e-4, atol=1e-4), (float(loss2), ref_mean)

    # 3) Odd T (13): exercises wrapper T-padding + in-kernel identity masking
    #    of padded frames, plus a non-power-of-two sub-block size.
    T3 = 13
    lp3 = log_probs[:, :T3]
    ref3 = float(np.mean(_rnnt_loss_ref(np.asarray(lp3), np.asarray(targets),
                                        np.asarray(target_lengths))))
    loss3 = jax.block_until_ready(
        rnnt_loss(lp3, targets, jnp.full((B,), T3, dtype=jnp.int32),
                  target_lengths, max_t_tile=8))
    assert np.allclose(float(loss3), ref3, rtol=1e-4, atol=1e-4), (float(loss3), ref3)

    # TODO(synk): torchaudio also validates inputs and supports grad clamping
    # (clamp>0) -- backward/clamp have no role in this forward-only kernel.
    print("KERNEL_OK")
</pallas_src>

<mosaic_0001>
module attributes {stable_mosaic.version = 11 : i64} {
  func.func @kernel(%arg0: i32, %arg1: i32, %arg2: memref<2x1x1xi32, #tpu.memory_space<vmem>>, %arg3: memref<2x8x1xi32, #tpu.memory_space<vmem>>, %arg4: memref<2x16x8x16xf32, #tpu.memory_space<vmem>>, %arg5: memref<2x1x8xf32, #tpu.memory_space<vmem>>, %arg6: memref<2x8xf32, #tpu.memory_space<vmem>>) attributes {dimension_semantics = [#tpu.dimension_semantics<parallel>, #tpu.dimension_semantics<arbitrary>], iteration_bounds = array<i64: 1, 1>, scalar_prefetch = 0 : i64, scratch_operands = 1 : i64, tpu.core_type = #tpu.core_type<tc>, window_params = [{transform_indices = @transform_0, window_bounds = array<i64: 2, 1, 1>}, {transform_indices = @transform_1, window_bounds = array<i64: 2, 8, 1>}, {transform_indices = @transform_2, window_bounds = array<i64: 2, 16, 8, 16>}, {transform_indices = @transform_3, window_bounds = array<i64: 2, 1, 8>}]} {
    %0 = tpu.iota {dimensions = array<i32: 0>} : vector<8x8xi32>
    %1 = tpu.iota {dimensions = array<i32: 1>} : vector<8x8xi32>
    %2 = arith.cmpi sle, %0, %1 : vector<8x8xi32>
    %3 = arith.extui %2 : vector<8x8xi1> to vector<8x8xi32>
    %4 = arith.sitofp %3 : vector<8x8xi32> to vector<8x8xf32>
    %5 = arith.cmpi slt, %0, %1 : vector<8x8xi32>
    %6 = arith.extui %5 : vector<8x8xi1> to vector<8x8xi32>
    %7 = arith.sitofp %6 : vector<8x8xi32> to vector<8x8xf32>
    %8 = tpu.iota {dimensions = array<i32: 1>} : vector<2x8xi32>
    %c0 = arith.constant 0 : index
    %c0_0 = arith.constant 0 : index
    %c0_1 = arith.constant 0 : index
    %9 = vector.load %arg2[%c0, %c0_0, %c0_1] : memref<2x1x1xi32, #tpu.memory_space<vmem>>, vector<2x1x1xi32>
    %10 = vector.shape_cast %9 : vector<2x1x1xi32> to vector<2x1xi32>
    %11 = vector.broadcast %10 : vector<2x1xi32> to vector<2x8xi32>
    %12 = arith.cmpi slt, %8, %11 : vector<2x8xi32>
    %c0_2 = arith.constant 0 : index
    %c0_3 = arith.constant 0 : index
    %c0_4 = arith.constant 0 : index
    %13 = vector.load %arg3[%c0_2, %c0_3, %c0_4] : memref<2x8x1xi32, #tpu.memory_space<vmem>>, vector<2x8x1xi32>
    %14 = vector.shape_cast %13 : vector<2x8x1xi32> to vector<2x1x8x1xi32>
    %c0_i32 = arith.constant 0 : i32
    %15 = arith.cmpi eq, %arg1, %c0_i32 : i32
    %16 = arith.extui %15 : i1 to i32
    %c0_i32_5 = arith.constant 0 : i32
    %17 = arith.cmpi ne, %16, %c0_i32_5 : i32
    scf.if %17 {
      %c0_i32_10 = arith.constant 0 : i32
      %22 = vector.broadcast %c0_i32_10 : i32 to vector<2x8xi32>
      %23 = arith.cmpi eq, %8, %22 : vector<2x8xi32>
      %cst = arith.constant 0.000000e+00 : f32
      %cst_11 = arith.constant -1.000000e+30 : f32
      %24 = vector.broadcast %cst : f32 to vector<2x8xf32>
      %25 = vector.broadcast %cst_11 : f32 to vector<2x8xf32>
      %26 = arith.select %23, %24, %25 : vector<2x8xi1>, vector<2x8xf32>
      %c0_12 = arith.constant 0 : index
      %c0_13 = arith.constant 0 : index
      %27 = vector.load %arg6[%c0_12, %c0_13] : memref<2x8xf32, #tpu.memory_space<vmem>>, vector<2x8xf32>
      tpu.vector_store %arg6[%c0_12, %c0_13], %26 {strides = array<i32>} : memref<2x8xf32, #tpu.memory_space<vmem>>, vector<2x8xf32>,
    } else {
    }
    %c0_i32_6 = arith.constant 0 : i32
    %c2_i32 = arith.constant 2 : i32
    %18 = arith.addi %c0_i32_6, %c2_i32 : i32
    %c1_i32 = arith.constant 1 : i32
    scf.for %arg7 = %c0_i32_6 to %18 step %c1_i32  : i32 {
      %c1_i32_10 = arith.constant 1 : i32
      %22 = arith.muli %arg7, %c1_i32_10 : i32
      %c0_i32_11 = arith.constant 0 : i32
      %23 = arith.addi %c0_i32_11, %22 : i32
      %c8_i32 = arith.constant 8 : i32
      %24 = arith.muli %23, %c8_i32 : i32
      %25 = tpu.assume_multiple %24, 8 : i32
      %c0_12 = arith.constant 0 : index
      %26 = arith.index_cast %25 : i32 to index
      %c0_13 = arith.constant 0 : index
      %c0_14 = arith.constant 0 : index
      %27 = vector.load %arg4[%c0_12, %26, %c0_13, %c0_14] : memref<2x16x8x16xf32, #tpu.memory_space<vmem>>, vector<2x8x8x16xf32>
      %cst = arith.constant dense<0xFF800000> : vector<2x8x8xf32>
      %28 = vector.multi_reduction <maximumf>, %27, %cst [3] : vector<2x8x8x16xf32> to vector<2x8x8xf32>
      %29 = vector.shape_cast %28 : vector<2x8x8xf32> to vector<2x8x8x1xf32>
      %30 = vector.broadcast %29 : vector<2x8x8x1xf32> to vector<2x8x8x16xf32>
      %31 = arith.subf %27, %30 : vector<2x8x8x16xf32>
      %32 = math.exp %31 : vector<2x8x8x16xf32>
      %cst_15 = arith.constant dense<0.000000e+00> : vector<2x8x8xf32>
      %33 = vector.multi_reduction <add>, %32, %cst_15 [3] : vector<2x8x8x16xf32> to vector<2x8x8xf32>
      %34 = vector.shape_cast %29 : vector<2x8x8x1xf32> to vector<2x8x8xf32>
      %35 = math.log %33 : vector<2x8x8xf32>
      %36 = arith.addf %34, %35 : vector<2x8x8xf32>
      %37 = vector.extract_strided_slice %27 {offsets = [0, 0, 0, 15], sizes = [2, 8, 8, 1], strides = [1, 1, 1, 1]} : vector<2x8x8x16xf32> to vector<2x8x8x1xf32>
      %38 = vector.shape_cast %37 : vector<2x8x8x1xf32> to vector<2x8x8xf32>
      %39 = arith.subf %38, %36 : vector<2x8x8xf32>
      %40 = tpu.iota {dimensions = array<i32: 3>} : vector<2x1x8x16xi32>
      %41 = vector.broadcast %14 : vector<2x1x8x1xi32> to vector<2x1x8x16xi32>
      %42 = arith.cmpi eq, %41, %40 : vector<2x1x8x16xi32>
      %cst_16 = arith.constant -1.000000e+30 : f32
      %43 = vector.shape_cast %42 : vector<2x1x8x16xi1> to vector<2x1x8x16xi1>
      %44 = vector.broadcast %43 : vector<2x1x8x16xi1> to vector<2x8x8x16xi1>
      %45 = vector.broadcast %cst_16 : f32 to vector<2x8x8x16xf32>
      %46 = arith.select %44, %27, %45 : vector<2x8x8x16xi1>, vector<2x8x8x16xf32>
      %cst_17 = arith.constant dense<0xFF800000> : vector<2x8x8xf32>
      %47 = vector.multi_reduction <maximumf>, %46, %cst_17 [3] : vector<2x8x8x16xf32> to vector<2x8x8xf32>
      %48 = vector.shape_cast %12 : vector<2x8xi1> to vector<2x1x8xi1>
      %49 = arith.subf %47, %36 : vector<2x8x8xf32>
      %cst_18 = arith.constant 0.000000e+00 : f32
      %50 = vector.shape_cast %48 : vector<2x1x8xi1> to vector<2x1x8xi1>
      %51 = vector.broadcast %50 : vector<2x1x8xi1> to vector<2x8x8xi1>
      %52 = vector.broadcast %cst_18 : f32 to vector<2x8x8xf32>
      %53 = arith.select %51, %49, %52 : vector<2x8x8xi1>, vector<2x8x8xf32>
      %54 = vector.shape_cast %53 : vector<2x8x8xf32> to vector<16x8xf32>
      %cst_19 = arith.constant dense<0.000000e+00> : vector<16x8xf32>
      %55 = tpu.matmul %54, %7, %cst_19 {dimension_numbers = #tpu.dot_dimension_numbers<[1], [0], [0], [1], [0, 0, 1, 1], [], []>} : vector<16x8xf32>, vector<8x8xf32>, vector<16x8xf32> -> vector<16x8xf32>
      %56 = vector.shape_cast %55 : vector<16x8xf32> to vector<2x8x8xf32>
      %c0_20 = arith.constant 0 : index
      %c0_21 = arith.constant 0 : index
      %57 = vector.load %arg6[%c0_20, %c0_21] : memref<2x8xf32, #tpu.memory_space<vmem>>, vector<2x8xf32>
      %58 = vector.extract_strided_slice %56 {offsets = [0, 0, 0], sizes = [2, 1, 8], strides = [1, 1, 1]} : vector<2x8x8xf32> to vector<2x1x8xf32>
      %59 = vector.shape_cast %58 : vector<2x1x8xf32> to vector<2x8xf32>
      %60 = arith.subf %57, %59 : vector<2x8xf32>
      %cst_22 = arith.constant dense<0xFF800000> : vector<2xf32>
      %61 = vector.multi_reduction <maximumf>, %60, %cst_22 [1] : vector<2x8xf32> to vector<2xf32>
      %62 = vector.shape_cast %61 : vector<2xf32> to vector<2x1xf32>
      %63 = vector.broadcast %62 : vector<2x1xf32> to vector<2x8xf32>
      %64 = arith.subf %60, %63 : vector<2x8xf32>
      %65 = math.exp %64 : vector<2x8xf32>
      %cst_23 = arith.constant dense<0.000000e+00> : vector<2x8xf32>
      %66 = tpu.matmul %65, %4, %cst_23 {dimension_numbers = #tpu.dot_dimension_numbers<[1], [0], [0], [1], [0, 0, 1, 1], [], []>} : vector<2x8xf32>, vector<8x8xf32>, vector<2x8xf32> -> vector<2x8xf32>
      %67 = vector.broadcast %62 : vector<2x1xf32> to vector<2x8xf32>
      %68 = arith.addf %59, %67 : vector<2x8xf32>
      %69 = math.log %66 : vector<2x8xf32>
      %70 = arith.addf %68, %69 : vector<2x8xf32>
      %71 = vector.extract_strided_slice %39 {offsets = [0, 0, 0], sizes = [2, 1, 8], strides = [1, 1, 1]} : vector<2x8x8xf32> to vector<2x1x8xf32>
      %72 = vector.shape_cast %71 : vector<2x1x8xf32> to vector<2x8xf32>
      %73 = arith.addf %70, %72 : vector<2x8xf32>
      %74 = vector.extract_strided_slice %56 {offsets = [0, 1, 0], sizes = [2, 1, 8], strides = [1, 1, 1]} : vector<2x8x8xf32> to vector<2x1x8xf32>
      %75 = vector.shape_cast %74 : vector<2x1x8xf32> to vector<2x8xf32>
      %76 = arith.subf %73, %75 : vector<2x8xf32>
      %cst_24 = arith.constant dense<0xFF800000> : vector<2xf32>
      %77 = vector.multi_reduction <maximumf>, %76, %cst_24 [1] : vector<2x8xf32> to vector<2xf32>
      %78 = vector.shape_cast %77 : vector<2xf32> to vector<2x1xf32>
      %79 = vector.broadcast %78 : vector<2x1xf32> to vector<2x8xf32>
      %80 = arith.subf %76, %79 : vector<2x8xf32>
      %81 = math.exp %80 : vector<2x8xf32>
      %cst_25 = arith.constant dense<0.000000e+00> : vector<2x8xf32>
      %82 = tpu.matmul %81, %4, %cst_25 {dimension_numbers = #tpu.dot_dimension_numbers<[1], [0], [0], [1], [0, 0, 1, 1], [], []>} : vector<2x8xf32>, vector<8x8xf32>, vector<2x8xf32> -> vector<2x8xf32>
      %83 = vector.broadcast %78 : vector<2x1xf32> to vector<2x8xf32>
      %84 = arith.addf %75, %83 : vector<2x8xf32>
      %85 = math.log %82 : vector<2x8xf32>
      %86 = arith.addf %84, %85 : vector<2x8xf32>
      %87 = vector.extract_strided_slice %39 {offsets = [0, 1, 0], sizes = [2, 1, 8], strides = [1, 1, 1]} : vector<2x8x8xf32> to vector<2x1x8xf32>
      %88 = vector.shape_cast %87 : vector<2x1x8xf32> to vector<2x8xf32>
      %89 = arith.addf %86, %88 : vector<2x8xf32>
      %90 = vector.extract_strided_slice %56 {offsets = [0, 2, 0], sizes = [2, 1, 8], strides = [1, 1, 1]} : vector<2x8x8xf32> to vector<2x1x8xf32>
      %91 = vector.shape_cast %90 : vector<2x1x8xf32> to vector<2x8xf32>
      %92 = arith.subf %89, %91 : vector<2x8xf32>
      %cst_26 = arith.constant dense<0xFF800000> : vector<2xf32>
      %93 = vector.multi_reduction <maximumf>, %92, %cst_26 [1] : vector<2x8xf32> to vector<2xf32>
      %94 = vector.shape_cast %93 : vector<2xf32> to vector<2x1xf32>
      %95 = vector.broadcast %94 : vector<2x1xf32> to vector<2x8xf32>
      %96 = arith.subf %92, %95 : vector<2x8xf32>
      %97 = math.exp %96 : vector<2x8xf32>
      %cst_27 = arith.constant dense<0.000000e+00> : vector<2x8xf32>
      %98 = tpu.matmul %97, %4, %cst_27 {dimension_numbers = #tpu.dot_dimension_numbers<[1], [0], [0], [1], [0, 0, 1, 1], [], []>} : vector<2x8xf32>, vector<8x8xf32>, vector<2x8xf32> -> vector<2x8xf32>
      %99 = vector.broadcast %94 : vector<2x1xf32> to vector<2x8xf32>
      %100 = arith.addf %91, %99 : vector<2x8xf32>
      %101 = math.log %98 : vector<2x8xf32>
      %102 = arith.addf %100, %101 : vector<2x8xf32>
      %103 = vector.extract_strided_slice %39 {offsets = [0, 2, 0], sizes = [2, 1, 8], strides = [1, 1, 1]} : vector<2x8x8xf32> to vector<2x1x8xf32>
      %104 = vector.shape_cast %103 : vector<2x1x8xf32> to vector<2x8xf32>
      %105 = arith.addf %102, %104 : vector<2x8xf32>
      %106 = vector.extract_strided_slice %56 {offsets = [0, 3, 0], sizes = [2, 1, 8], strides = [1, 1, 1]} : vector<2x8x8xf32> to vector<2x1x8xf32>
      %107 = vector.shape_cast %106 : vector<2x1x8xf32> to vector<2x8xf32>
      %108 = arith.subf %105, %107 : vector<2x8xf32>
      %cst_28 = arith.constant dense<0xFF800000> : vector<2xf32>
      %109 = vector.multi_reduction <maximumf>, %108, %cst_28 [1] : vector<2x8xf32> to vector<2xf32>
      %110 = vector.shape_cast %109 : vector<2xf32> to vector<2x1xf32>
      %111 = vector.broadcast %110 : vector<2x1xf32> to vector<2x8xf32>
      %112 = arith.subf %108, %111 : vector<2x8xf32>
      %113 = math.exp %112 : vector<2x8xf32>
      %cst_29 = arith.constant dense<0.000000e+00> : vector<2x8xf32>
      %114 = tpu.matmul %113, %4, %cst_29 {dimension_numbers = #tpu.dot_dimension_numbers<[1], [0], [0], [1], [0, 0, 1, 1], [], []>} : vector<2x8xf32>, vector<8x8xf32>, vector<2x8xf32> -> vector<2x8xf32>
      %115 = vector.broadcast %110 : vector<2x1xf32> to vector<2x8xf32>
      %116 = arith.addf %107, %115 : vector<2x8xf32>
      %117 = math.log %114 : vector<2x8xf32>
      %118 = arith.addf %116, %117 : vector<2x8xf32>
      %119 = vector.extract_strided_slice %39 {offsets = [0, 3, 0], sizes = [2, 1, 8], strides = [1, 1, 1]} : vector<2x8x8xf32> to vector<2x1x8xf32>
      %120 = vector.shape_cast %119 : vector<2x1x8xf32> to vector<2x8xf32>
      %121 = arith.addf %118, %120 : vector<2x8xf32>
      %122 = vector.extract_strided_slice %56 {offsets = [0, 4, 0], sizes = [2, 1, 8], strides = [1, 1, 1]} : vector<2x8x8xf32> to vector<2x1x8xf32>
      %123 = vector.shape_cast %122 : vector<2x1x8xf32> to vector<2x8xf32>
      %124 = arith.subf %121, %123 : vector<2x8xf32>
      %cst_30 = arith.constant dense<0xFF800000> : vector<2xf32>
      %125 = vector.multi_reduction <maximumf>, %124, %cst_30 [1] : vector<2x8xf32> to vector<2xf32>
      %126 = vector.shape_cast %125 : vector<2xf32> to vector<2x1xf32>
      %127 = vector.broadcast %126 : vector<2x1xf32> to vector<2x8xf32>
      %128 = arith.subf %124, %127 : vector<2x8xf32>
      %129 = math.exp %128 : vector<2x8xf32>
      %cst_31 = arith.constant dense<0.000000e+00> : vector<2x8xf32>
      %130 = tpu.matmul %129, %4, %cst_31 {dimension_numbers = #tpu.dot_dimension_numbers<[1], [0], [0], [1], [0, 0, 1, 1], [], []>} : vector<2x8xf32>, vector<8x8xf32>, vector<2x8xf32> -> vector<2x8xf32>
      %131 = vector.broadcast %126 : vector<2x1xf32> to vector<2x8xf32>
      %132 = arith.addf %123, %131 : vector<2x8xf32>
      %133 = math.log %130 : vector<2x8xf32>
      %134 = arith.addf %132, %133 : vector<2x8xf32>
      %135 = vector.extract_strided_slice %39 {offsets = [0, 4, 0], sizes = [2, 1, 8], strides = [1, 1, 1]} : vector<2x8x8xf32> to vector<2x1x8xf32>
      %136 = vector.shape_cast %135 : vector<2x1x8xf32> to vector<2x8xf32>
      %137 = arith.addf %134, %136 : vector<2x8xf32>
      %138 = vector.extract_strided_slice %56 {offsets = [0, 5, 0], sizes = [2, 1, 8], strides = [1, 1, 1]} : vector<2x8x8xf32> to vector<2x1x8xf32>
      %139 = vector.shape_cast %138 : vector<2x1x8xf32> to vector<2x8xf32>
      %140 = arith.subf %137, %139 : vector<2x8xf32>
      %cst_32 = arith.constant dense<0xFF800000> : vector<2xf32>
      %141 = vector.multi_reduction <maximumf>, %140, %cst_32 [1] : vector<2x8xf32> to vector<2xf32>
      %142 = vector.shape_cast %141 : vector<2xf32> to vector<2x1xf32>
      %143 = vector.broadcast %142 : vector<2x1xf32> to vector<2x8xf32>
      %144 = arith.subf %140, %143 : vector<2x8xf32>
      %145 = math.exp %144 : vector<2x8xf32>
      %cst_33 = arith.constant dense<0.000000e+00> : vector<2x8xf32>
      %146 = tpu.matmul %145, %4, %cst_33 {dimension_numbers = #tpu.dot_dimension_numbers<[1], [0], [0], [1], [0, 0, 1, 1], [], []>} : vector<2x8xf32>, vector<8x8xf32>, vector<2x8xf32> -> vector<2x8xf32>
      %147 = vector.broadcast %142 : vector<2x1xf32> to vector<2x8xf32>
      %148 = arith.addf %139, %147 : vector<2x8xf32>
      %149 = math.log %146 : vector<2x8xf32>
      %150 = arith.addf %148, %149 : vector<2x8xf32>
      %151 = vector.extract_strided_slice %39 {offsets = [0, 5, 0], sizes = [2, 1, 8], strides = [1, 1, 1]} : vector<2x8x8xf32> to vector<2x1x8xf32>
      %152 = vector.shape_cast %151 : vector<2x1x8xf32> to vector<2x8xf32>
      %153 = arith.addf %150, %152 : vector<2x8xf32>
      %154 = vector.extract_strided_slice %56 {offsets = [0, 6, 0], sizes = [2, 1, 8], strides = [1, 1, 1]} : vector<2x8x8xf32> to vector<2x1x8xf32>
      %155 = vector.shape_cast %154 : vector<2x1x8xf32> to vector<2x8xf32>
      %156 = arith.subf %153, %155 : vector<2x8xf32>
      %cst_34 = arith.constant dense<0xFF800000> : vector<2xf32>
      %157 = vector.multi_reduction <maximumf>, %156, %cst_34 [1] : vector<2x8xf32> to vector<2xf32>
      %158 = vector.shape_cast %157 : vector<2xf32> to vector<2x1xf32>
      %159 = vector.broadcast %158 : vector<2x1xf32> to vector<2x8xf32>
      %160 = arith.subf %156, %159 : vector<2x8xf32>
      %161 = math.exp %160 : vector<2x8xf32>
      %cst_35 = arith.constant dense<0.000000e+00> : vector<2x8xf32>
      %162 = tpu.matmul %161, %4, %cst_35 {dimension_numbers = #tpu.dot_dimension_numbers<[1], [0], [0], [1], [0, 0, 1, 1], [], []>} : vector<2x8xf32>, vector<8x8xf32>, vector<2x8xf32> -> vector<2x8xf32>
      %163 = vector.broadcast %158 : vector<2x1xf32> to vector<2x8xf32>
      %164 = arith.addf %155, %163 : vector<2x8xf32>
      %165 = math.log %162 : vector<2x8xf32>
      %166 = arith.addf %164, %165 : vector<2x8xf32>
      %167 = vector.extract_strided_slice %39 {offsets = [0, 6, 0], sizes = [2, 1, 8], strides = [1, 1, 1]} : vector<2x8x8xf32> to vector<2x1x8xf32>
      %168 = vector.shape_cast %167 : vector<2x1x8xf32> to vector<2x8xf32>
      %169 = arith.addf %166, %168 : vector<2x8xf32>
      %170 = vector.extract_strided_slice %56 {offsets = [0, 7, 0], sizes = [2, 1, 8], strides = [1, 1, 1]} : vector<2x8x8xf32> to vector<2x1x8xf32>
      %171 = vector.shape_cast %170 : vector<2x1x8xf32> to vector<2x8xf32>
      %172 = arith.subf %169, %171 : vector<2x8xf32>
      %cst_36 = arith.constant dense<0xFF800000> : vector<2xf32>
      %173 = vector.multi_reduction <maximumf>, %172, %cst_36 [1] : vector<2x8xf32> to vector<2xf32>
      %174 = vector.shape_cast %173 : vector<2xf32> to vector<2x1xf32>
      %175 = vector.broadcast %174 : vector<2x1xf32> to vector<2x8xf32>
      %176 = arith.subf %172, %175 : vector<2x8xf32>
      %177 = math.exp %176 : vector<2x8xf32>
      %cst_37 = arith.constant dense<0.000000e+00> : vector<2x8xf32>
      %178 = tpu.matmul %177, %4, %cst_37 {dimension_numbers = #tpu.dot_dimension_numbers<[1], [0], [0], [1], [0, 0, 1, 1], [], []>} : vector<2x8xf32>, vector<8x8xf32>, vector<2x8xf32> -> vector<2x8xf32>
      %179 = vector.broadcast %174 : vector<2x1xf32> to vector<2x8xf32>
      %180 = arith.addf %171, %179 : vector<2x8xf32>
      %181 = math.log %178 : vector<2x8xf32>
      %182 = arith.addf %180, %181 : vector<2x8xf32>
      %183 = vector.extract_strided_slice %39 {offsets = [0, 7, 0], sizes = [2, 1, 8], strides = [1, 1, 1]} : vector<2x8x8xf32> to vector<2x1x8xf32>
      %184 = vector.shape_cast %183 : vector<2x1x8xf32> to vector<2x8xf32>
      %185 = arith.addf %182, %184 : vector<2x8xf32>
      %c0_38 = arith.constant 0 : index
      %c0_39 = arith.constant 0 : index
      %186 = vector.load %arg6[%c0_38, %c0_39] : memref<2x8xf32, #tpu.memory_space<vmem>>, vector<2x8xf32>
      tpu.vector_store %arg6[%c0_38, %c0_39], %185 {strides = array<i32>} : memref<2x8xf32, #tpu.memory_space<vmem>>, vector<2x8xf32>,
    }
    %c2_i32_7 = arith.constant 2 : i32
    %c0_i32_8 = arith.constant 0 : i32
    %19 = arith.cmpi eq, %arg1, %c0_i32_8 : i32
    %20 = arith.extui %19 : i1 to i32
    %c0_i32_9 = arith.constant 0 : i32
    %21 = arith.cmpi ne, %20, %c0_i32_9 : i32
    scf.if %21 {
      %22 = vector.broadcast %10 : vector<2x1xi32> to vector<2x8xi32>
      %23 = arith.cmpi eq, %8, %22 : vector<2x8xi32>
      %c0_10 = arith.constant 0 : index
      %c0_11 = arith.constant 0 : index
      %24 = vector.load %arg6[%c0_10, %c0_11] : memref<2x8xf32, #tpu.memory_space<vmem>>, vector<2x8xf32>
      %cst = arith.constant 0.000000e+00 : f32
      %25 = vector.broadcast %cst : f32 to vector<2x8xf32>
      %26 = arith.subf %25, %24 : vector<2x8xf32>
      %cst_12 = arith.constant 0.000000e+00 : f32
      %27 = vector.broadcast %cst_12 : f32 to vector<2x8xf32>
      %28 = arith.select %23, %26, %27 : vector<2x8xi1>, vector<2x8xf32>
      %29 = vector.shape_cast %28 : vector<2x8xf32> to vector<2x1x8xf32>
      %c0_13 = arith.constant 0 : index
      %c0_14 = arith.constant 0 : index
      %c0_15 = arith.constant 0 : index
      %30 = vector.load %arg5[%c0_13, %c0_14, %c0_15] : memref<2x1x8xf32, #tpu.memory_space<vmem>>, vector<2x1x8xf32>
      tpu.vector_store %arg5[%c0_13, %c0_14, %c0_15], %29 {strides = array<i32>} : memref<2x1x8xf32, #tpu.memory_space<vmem>>, vector<2x1x8xf32>,
    } else {
    }
    return
  }
  func.func @transform_0(%arg0: i32, %arg1: i32) -> (i32, i32, i32) {
    %c0_i32 = arith.constant 0 : i32
    %c0_i32_0 = arith.constant 0 : i32
    %c0_i32_1 = arith.constant 0 : i32
    return %arg0, %c0_i32, %c0_i32_0 : i32, i32, i32
  }
  func.func @transform_1(%arg0: i32, %arg1: i32) -> (i32, i32, i32) {
    %c0_i32 = arith.constant 0 : i32
    %c0_i32_0 = arith.constant 0 : i32
    %c0_i32_1 = arith.constant 0 : i32
    return %arg0, %c0_i32, %c0_i32_0 : i32, i32, i32
  }
  func.func @transform_2(%arg0: i32, %arg1: i32) -> (i32, i32, i32, i32) {
    %c0_i32 = arith.constant 0 : i32
    %c0_i32_0 = arith.constant 0 : i32
    %c0_i32_1 = arith.constant 0 : i32
    return %arg0, %arg1, %c0_i32, %c0_i32_0 : i32, i32, i32, i32
  }
  func.func @transform_3(%arg0: i32, %arg1: i32) -> (i32, i32, i32) {
    %c0_i32 = arith.constant 0 : i32
    %c0_i32_0 = arith.constant 0 : i32
    %c0_i32_1 = arith.constant 0 : i32
    return %arg0, %c0_i32, %c0_i32_0 : i32, i32, i32
  }
}

</mosaic_0001>

<bundles_post_ra>
// kernel: tpu_custom_call.1
= control target key start
LH: loop header
LB: loop body
LE: loop exit
PB: predicated region body
PF: predicated region fallthrough
CT: control target
= control target key end

     0   :  { %8 = vsyncpa [#allocation4], 0  ;;  %s1933_s0 = inlined_call_operand.vmem [shape: s32[2,1,1], index: 0, kind: input, shape index: {}]   ;;  %s1934_s1 = inlined_call_operand.vmem [shape: s32[2,8,1], index: 1, kind: input, shape index: {}]   ;;  %s1935_s2 = inlined_call_operand.hbm [shape: f32[2,16,8,16], index: 2, kind: input, shape index: {}]   ;;  %s1936_s3 = inlined_call_operand.hbm [shape: f32[2,1,8], index: 3, kind: output, shape index: {}]  }
   0x1   :  { %9 = vsyncpa [#allocation5], 0  ;;  %s18_s14 = sshll.u32 %s1935_s2, 4  ;;  %s1354_s15 = smov [#allocation3]   ;;  %s19_s14 = int_to_ptr.hbm [resolvable:$true] %s18_s14 }
   0x2   :  { %s20_s16 = sshll.u32 %s1354_s15, 4  ;;  %s1355_s17 = smov 128   ;;  %s21_s16 = int_to_ptr.vmem [resolvable:$true] %s20_s16 }
   0x3   :  { %s1356_s18 = smov 8  }
   0x4   :  { %26 = dma.hbm_to_vmem [thread:$0]  %s19_s14, 4096, %s21_s16, [#allocation4], %s1355_s17, %s1355_s17, %s1356_s18  }
   0x5   :  { %1346 = dma.done.wait [#allocation4], 4096  }
   0x6   :  { %1347 = vsyncadd [#allocation4], 4294963200  ;;  %v31_v0 = vlaneseq  ;;  %v1357_v1 = vmov 0   ;;  %vm64_vm0 = vcmask 58368   ;;  %v1358_v5 = vmov -1e+30  }
   0x7   :  { %1172 = vset.pattern.permute.xlu0 %v1357_v1  ;;  %v1405_v7 = vld [vmem:[%s1934_s1] sm:$0xff]  ;;  %v1410_v8 = vld [vmem:[%s1934_s1 + $0x8] sm:$0xff] }
   0x8   :  { %v1388_v2 = vshrl.u32 %v31_v0, 7  ;;  %v1390_v3 = vand.u32 127, %v31_v0  ;;  %v41_v9 = vld [vmem:[%s1933_s0] sm:$0x1]  ;;  %v42_v10 = vld [vmem:[%s1933_s0 + $0x1] sm:$0x1] }
   0x9   :  { %44 = vperm.xlu0 %1172, %v41_v9   ;;  %s1432_s0 = smov 0  }
   0xa   :  { %vm1394_vm1 = vcmp.le.s32.totalorder %v1388_v2, %v1390_v3  ;;  %vm38_vm2 = vcmp.lt.s32.totalorder %v1388_v2, %v1390_v3  ;;  %vm62_vm3 = vcmp.eq.s32.totalorder %v1390_v3, 0 }
   0xb   :  { %v63_v6 = vsel %vm62_vm3, 0.0, %v1358_v5 }
   0xc   :  { %65 = vst.msk [vmem:[#allocation2] sm:$0x3] %vm64_vm0, %v63_v6 }
  0x11   :  { %48 = vperm.xlu0 %1172, %v42_v10  }
  0x7b   :  { %v1418_v11 = vpop.permute.xlu0 %44 }
  0x7c   :  { %v46_v12 = vperm.slane %v1418_v11, 0 }
  0x7e   :  { %51 = vst [vmem:[#allocation1] ss:$9 sm:$0xff] %v46_v12 }
  0x83   :  { %v1423_v13 = vpop.permute.xlu0 %48 }
  0x84   :  { %v50_v14 = vperm.slane %v1423_v13, 0 }
  0x86   :  { %53 = vst [vmem:[#allocation1 + $0x1] ss:$9 sm:$0xff] %v50_v14 }
  0x8d   :  { %v1428_v15 = vld [vmem:[#allocation1] sm:$0xff] }
  0x8e   :  { %vm55_vm4 = vcmp.lt.s32.totalorder %v1390_v3, %v1428_v15 }
  0x8f LB: > { %s1152_s1 = sshll.u32 %s1352_s0, 6  ;;  %vm91_vm5 = vcmask 130048   ;;  %v1359_v22 = vmov 0   ;;  %vm432_vm8 = vcmask 1041409   ;;  %vm434_vm9 = vcmask 1042434   ;;  %s71_s0 = sadd.s32 1, %s1352_s0   ;;  %s1352_s0 = sphi %s1432_s0, %s71_s0  }
  0x90   : > { %s1438_s26 = scalar_lea.vmem [#allocation3], %s1152_s1  ;;  %1173 = vset.pattern.permute.xlu1 %v1359_v22  ;;  %1174 = vset.pattern.permute.xlu2 %v1359_v22  ;;  %vm436_vm10 = vcmask 1043459   ;;  %vm438_vm11 = vcmask 1044484   ;;  %vm440_vm12 = vcmask 1045509   ;;  %vm442_vm13 = vcmask 1046534   ;;  %p68_p0 = scmp.ge.s32.totalorder %s71_s0, 2  }
  0x91   : > { %v1441_v16 = vld [vmem:[%s1438_s26 + $0x10] sm:$0xff]  ;;  %v1446_v18 = vld [vmem:[%s1438_s26] sm:$0xff]  ;;  %v1458_v23 = vld [vmem:[%s1438_s26 + $0x18] sm:$0xff]  ;;  %vm444_vm14 = vcmask 1047559   ;;  %vm457_vm3 = vcmask 64512   ;;  %s1362_s27 = smov (%p68_p0), [#allocation6]  }
  0x92   : > { %v98_v17 = vsel %vm91_vm5, %v1441_v16, -inf  ;;  %v1449_v19 = vld [vmem:[%s1438_s26 + $0x20] sm:$0xff]  ;;  %v92_v20 = vsel %vm91_vm5, %v1446_v18, -inf  ;;  %v1461_v24 = vld [vmem:[%s1438_s26 + $0x8] sm:$0xff]  ;;  %v101_v26 = vsel %vm91_vm5, %v1458_v23, -inf  ;;  %v1473_v29 = vld [vmem:[%s1438_s26 + $0x38] sm:$0xff] }
  0x93   : > { %99 = vmax.xlane.f32.xlu1 %v98_v17  ;;  %v104_v21 = vsel %vm91_vm5, %v1449_v19, -inf  ;;  %93 = vmax.xlane.f32.xlu0 %v92_v20  ;;  %v1464_v25 = vld [vmem:[%s1438_s26 + $0x28] sm:$0xff]  ;;  %v95_v27 = vsel %vm91_vm5, %v1461_v24, -inf  ;;  %v1476_v30 = vld [vmem:[%s1438_s26 + $0x30] sm:$0xff]  ;;  %v113_v31 = vsel %vm91_vm5, %v1473_v29, -inf  ;;  %v1488_v35 = vld [vmem:[%s1438_s26 + $0x80] sm:$0xff] }
  0x94   : > { %105 = vmax.xlane.f32.xlu2 %v104_v21  ;;  %v107_v28 = vsel %vm91_vm5, %v1464_v25, -inf  ;;  %v110_v32 = vsel %vm91_vm5, %v1476_v30, -inf  ;;  %v1483_v33 = vld [vmem:[%s1438_s26 + $0x90] sm:$0xff]  ;;  %v1491_v36 = vld [vmem:[%s1438_s26 + $0x88] sm:$0xff]  ;;  %v116_v38 = vsel %vm91_vm5, %v1488_v35, -inf  ;;  %v1503_v41 = vld [vmem:[%s1438_s26 + $0x98] sm:$0xff] }
  0x95   : > { %v122_v34 = vsel %vm91_vm5, %v1483_v33, -inf  ;;  %v1494_v37 = vld [vmem:[%s1438_s26 + $0xa8] sm:$0xff]  ;;  %v119_v39 = vsel %vm91_vm5, %v1491_v36, -inf  ;;  %v1506_v42 = vld [vmem:[%s1438_s26 + $0xa0] sm:$0xff]  ;;  %v125_v43 = vsel %vm91_vm5, %v1503_v41, -inf  ;;  %v1513_v45 = vld [vmem:[%s1438_s26 + $0xb0] sm:$0xff] }
  0x96   : > { %v131_v40 = vsel %vm91_vm5, %v1494_v37, -inf  ;;  %v128_v44 = vsel %vm91_vm5, %v1506_v42, -inf  ;;  %v1516_v46 = vld [vmem:[%s1438_s26 + $0xb8] sm:$0xff]  ;;  %v134_v47 = vsel %vm91_vm5, %v1513_v45, -inf  ;;  %1089 = vst [vmem:[#allocation1] ss:$9 sm:$0xff] (%p68_p0), %v46_v12 }
  0x97   : > { %v137_v48 = vsel %vm91_vm5, %v1516_v46, -inf  ;;  %1091 = vst [vmem:[#allocation1 + $0x1] ss:$9 sm:$0xff] (%p68_p0), %v50_v14  ;;  %s1107_s28 = sshll.u32 (%p68_p0), %s1362_s27, 4  ;;  %s1109_s4 = sshll.u32 (%p68_p0), %s1936_s3, 4  ;;  %s1108_s28 = int_to_ptr.vmem [resolvable:$true] %s1107_s28  ;;  %s1110_s4 = int_to_ptr.hbm [resolvable:$true] %s1109_s4 }
  0x98   :  { %s1363_s5 = smov (%p68_p0), 16   ;;  %s1364_s6 = smov (%p68_p0), 1  }
  0x9b   : > { %102 = vmax.xlane.f32.xlu1 %v101_v26  ;;  %96 = vmax.xlane.f32.xlu0 %v95_v27 }
  0x9c   : > { %108 = vmax.xlane.f32.xlu2 %v107_v28 }
  0xa3   : > { %114 = vmax.xlane.f32.xlu1 %v113_v31  ;;  %111 = vmax.xlane.f32.xlu0 %v110_v32 }
  0xa4   : > { %117 = vmax.xlane.f32.xlu2 %v116_v38 }
  0xab   : > { %123 = vmax.xlane.f32.xlu1 %v122_v34  ;;  %120 = vmax.xlane.f32.xlu0 %v119_v39 }
  0xac   : > { %126 = vmax.xlane.f32.xlu2 %v125_v43 }
  0xb3   : > { %132 = vmax.xlane.f32.xlu1 %v131_v40  ;;  %129 = vmax.xlane.f32.xlu0 %v128_v44 }
  0xb4   : > { %135 = vmax.xlane.f32.xlu2 %v134_v47 }
  0xbb   : > { %138 = vmax.xlane.f32.xlu0 %v137_v48 }
  0xcc   : > { %301 = vperm.xlu1 %1173, %v1405_v7   ;;  %304 = vperm.xlu2 %1174, %v1410_v8  }
 0x106   : > { %v1524_v49 = vpop.xlane.xlu1 %99  ;;  %v1528_v51 = vpop.xlane.xlu0 %93 }
 0x107   : > { %v1532_v53 = vpop.xlane.xlu2 %105  ;;  %v140_v60 = vsub.f32 %v1446_v18, %v1528_v51  ;;  %v142_v48 = vsub.f32 %v1441_v16, %v1524_v49 }
 0x108   : > { %v144_v63 = vsub.f32 %v1449_v19, %v1532_v53 }
 0x109   : > { %v156_v62 = vmul.f32 1.442695, %v140_v60 }
 0x10a   : > { %v164_v31 = vmul.f32 1.442695, %v144_v63 }
 0x10b   : > { %1178 = vpow2.f32 %v156_v62 }
 0x10c   : > { %1180 = vpow2.f32 %v164_v31 }
 0x10e   : > { %v1526_v50 = vpop.xlane.xlu1 %102  ;;  %v1534_v54 = vpop.xlane.xlu0 %96 }
 0x10f   : > { %v1538_v56 = vpop.xlane.xlu2 %108  ;;  %v141_v1 = vsub.f32 %v1461_v24, %v1534_v54  ;;  %v143_v6 = vsub.f32 %v1458_v23, %v1526_v50 }
 0x111   : > { %v158_v32 = vmul.f32 1.442695, %v141_v1  ;;  %v162_v34 = vmul.f32 1.442695, %v143_v6  ;;  %v1179_v38 = vpop.eup %1178 }
 0x112   : > { %v188_v47 = vsel %vm91_vm5, %v1179_v38, 0.0  ;;  %v1181_v1 = vpop.eup %1180 }
 0x113   : > { %1182 = vpow2.f32 %v158_v32  ;;  %v200_v31 = vsel %vm91_vm5, %v1181_v1, 0.0 }
 0x114   : > { %1184 = vpow2.f32 %v162_v34 }
 0x116   : > { %v1530_v52 = vpop.xlane.xlu1 %114  ;;  %v1540_v57 = vpop.xlane.xlu0 %111 }
 0x117   : > { %v1544_v59 = vpop.xlane.xlu2 %117 }
 0x11e   : > { %v1536_v55 = vpop.xlane.xlu1 %123  ;;  %v1548_v61 = vpop.xlane.xlu0 %120 }
 0x11f   : > { %v1570_v20 = vpop.xlane.xlu2 %126  ;;  %v150_v44 = vsub.f32 %v1483_v33, %v1536_v55 }
 0x120   : > { %v151_v43 = vsub.f32 %v1503_v41, %v1570_v20 }
 0x121   : > { %v176_v6 = vmul.f32 1.442695, %v150_v44 }
 0x122   : > { %v178_v62 = vmul.f32 1.442695, %v151_v43 }
 0x124   : > { %1186 = vpow2.f32 %v178_v62 }
 0x125   : > { %1188 = vpow2.f32 %v176_v6 }
 0x126   : > { %v1542_v58 = vpop.xlane.xlu1 %132  ;;  %v1575_v28 = vpop.xlane.xlu0 %129 }
 0x127   : > { %v1592_v63 = vpop.xlane.xlu2 %135 }
 0x13e   : > { %v302_v0 = vpop.permute.xlu1 %301 }
 0x13f   : > { %vm1555_vm6 = vcmp.eq.s32.totalorder %v302_v0, %v1390_v3  ;;  %v1594_v0 = vpop.xlane.xlu0 %138 }
 0x140   : > { %v313_v9 = vsel %vm1555_vm6, %v1461_v24, -1e+30  ;;  %v312_v10 = vsel %vm1555_vm6, %v1446_v18, -1e+30  ;;  %v315_v17 = vsel %vm1555_vm6, %v1458_v23, -1e+30 }
 0x141   : > { %v331_v21 = vsel %vm91_vm5, %v313_v9, -inf  ;;  %v328_v26 = vsel %vm91_vm5, %v312_v10, -inf  ;;  %v337_v27 = vsel %vm91_vm5, %v315_v17, -inf  ;;  %v316_v39 = vsel %vm1555_vm6, %v1449_v19, -1e+30  ;;  %v1183_v9 = vpop.eup %1182 }
 0x142   : > { %332 = vmax.xlane.f32.xlu1 %v331_v21  ;;  %329 = vmax.xlane.f32.xlu2 %v328_v26  ;;  %v314_v40 = vsel %vm1555_vm6, %v1441_v16, -1e+30  ;;  %v340_v60 = vsel %vm91_vm5, %v316_v39, -inf  ;;  %v160_v10 = vmul.f32 1.442695, %v142_v48  ;;  %v154_v17 = vsub.f32 %v1513_v45, %v1592_v63  ;;  %v1185_v21 = vpop.eup %1184 }
 0x143   : > { %338 = vmax.xlane.f32.xlu0 %v337_v27  ;;  %v334_v19 = vsel %vm91_vm5, %v314_v40, -inf  ;;  %v155_v26 = vsub.f32 %v1516_v46, %v1594_v0  ;;  %v145_v27 = vsub.f32 %v1464_v25, %v1538_v56  ;;  %v191_v32 = vsel %vm91_vm5, %v1183_v9, 0.0  ;;  %v1187_v43 = vpop.eup %1186 }
 0x144   : > { %1190 = vpow2.f32 %v160_v10  ;;  %v197_v34 = vsel %vm91_vm5, %v1185_v21, 0.0  ;;  %v184_v38 = vmul.f32 1.442695, %v154_v17  ;;  %v1189_v44 = vpop.eup %1188  ;;  %v146_v48 = vsub.f32 %v1476_v30, %v1540_v57 }
 0x145   : > { %v186_v39 = vmul.f32 1.442695, %v155_v26  ;;  %v166_v40 = vmul.f32 1.442695, %v145_v27  ;;  %v147_v27 = vsub.f32 %v1473_v29, %v1530_v52 }
 0x146   : > { %1192 = vpow2.f32 %v184_v38  ;;  %v168_v6 = vmul.f32 1.442695, %v146_v48  ;;  %v318_v38 = vsel %vm1555_vm6, %v1476_v30, -1e+30 }
 0x147   : > { %1194 = vpow2.f32 %v186_v39  ;;  %v305_v39 = vpop.permute.xlu2 %304 }
 0x148   : > { %1196 = vpow2.f32 %v166_v40  ;;  %v148_v40 = vsub.f32 %v1488_v35, %v1544_v59  ;;  %vm1627_vm7 = vcmp.eq.s32.totalorder %v305_v39, %v1390_v3 }
 0x149   : > { %1198 = vpow2.f32 %v168_v6  ;;  %v322_v30 = vsel %vm1627_vm7, %v1483_v33, -1e+30  ;;  %v326_v5 = vsel %vm1627_vm7, %v1513_v45, -1e+30 }
 0x14a   : > { %341 = vmax.xlane.f32.xlu1 %v340_v60  ;;  %335 = vmax.xlane.f32.xlu2 %v334_v19  ;;  %v221_v60 = vsel %vm91_vm5, %v1187_v43, 0.0  ;;  %v218_v19 = vsel %vm91_vm5, %v1189_v44, 0.0 }
 0x14b   : > { %189 = vadd.xlane.f32.xlu0 %v188_v47  ;;  %v1191_v47 = vpop.eup %1190 }
 0x14c   : > { %v194_v62 = vsel %vm91_vm5, %v1191_v47, 0.0  ;;  %v1193_v1 = vpop.eup %1192  ;;  %v346_v47 = vsel %vm91_vm5, %v318_v38, -inf  ;;  %v327_v38 = vsel %vm1627_vm7, %v1516_v46, -1e+30 }
 0x14d   : > { %v1195_v9 = vpop.eup %1194  ;;  %v230_v17 = vsel %vm91_vm5, %v1193_v1, 0.0  ;;  %v358_v1 = vsel %vm91_vm5, %v322_v30, -inf }
 0x14e   : > { %v1197_v10 = vpop.eup %1196  ;;  %v233_v21 = vsel %vm91_vm5, %v1195_v9, 0.0 }
 0x14f   : > { %v203_v26 = vsel %vm91_vm5, %v1197_v10, 0.0 }
 0x152   : > { %201 = vadd.xlane.f32.xlu1 %v200_v31  ;;  %198 = vadd.xlane.f32.xlu2 %v197_v34  ;;  %v1199_v31 = vpop.eup %1198  ;;  %v319_v34 = vsel %vm1555_vm6, %v1473_v29, -1e+30  ;;  %v172_v29 = vmul.f32 1.442695, %v148_v40 }
 0x153   : > { %192 = vadd.xlane.f32.xlu0 %v191_v32  ;;  %v170_v32 = vmul.f32 1.442695, %v147_v27  ;;  %v206_v43 = vsel %vm91_vm5, %v1199_v31, 0.0  ;;  %v349_v44 = vsel %vm91_vm5, %v319_v34, -inf  ;;  %v325_v34 = vsel %vm1627_vm7, %v1494_v37, -1e+30 }
 0x154   : > { %v367_v39 = vsel %vm91_vm5, %v325_v34, -inf }
 0x155   : > { %1200 = vpow2.f32 %v170_v32 }
 0x156   : > { %1202 = vpow2.f32 %v172_v29 }
 0x15a   : > { %222 = vadd.xlane.f32.xlu1 %v221_v60  ;;  %219 = vadd.xlane.f32.xlu2 %v218_v19  ;;  %v321_v60 = vsel %vm1627_vm7, %v1491_v36, -1e+30 }
 0x15b   : > { %195 = vadd.xlane.f32.xlu0 %v194_v62  ;;  %v1201_v19 = vpop.eup %1200  ;;  %v149_v62 = vsub.f32 %v1491_v36, %v1548_v61  ;;  %v355_v6 = vsel %vm91_vm5, %v321_v60, -inf }
 0x15c   : > { %v209_v9 = vsel %vm91_vm5, %v1201_v19, 0.0 }
 0x15d   : > { %v174_v10 = vmul.f32 1.442695, %v149_v62  ;;  %v317_v62 = vsel %vm1555_vm6, %v1464_v25, -1e+30 }
 0x15f   : > { %1204 = vpow2.f32 %v174_v10 }
 0x162   : > { %231 = vadd.xlane.f32.xlu1 %v230_v17  ;;  %234 = vadd.xlane.f32.xlu2 %v233_v21  ;;  %v324_v17 = vsel %vm1627_vm7, %v1506_v42, -1e+30  ;;  %v1203_v21 = vpop.eup %1202 }
 0x163   : > { %204 = vadd.xlane.f32.xlu0 %v203_v26  ;;  %v152_v26 = vsub.f32 %v1506_v42, %v1575_v28  ;;  %v364_v27 = vsel %vm91_vm5, %v324_v17, -inf  ;;  %v212_v31 = vsel %vm91_vm5, %v1203_v21, 0.0  ;;  %v1360_v17 = vmov 15  }
 0x164   : > { %1176 = vset.pattern.permute.xlu2 %v1360_v17  ;;  %1175 = vset.pattern.permute.xlu0 %v1360_v17  ;;  %v370_v21 = vsel %vm91_vm5, %v326_v5, -inf }
 0x165   : > { %v180_v32 = vmul.f32 1.442695, %v152_v26  ;;  %v1205_v40 = vpop.eup %1204  ;;  %1177 = vset.pattern.permute.xlu1 %v1360_v17 }
 0x167   : > { %1206 = vpow2.f32 %v180_v32 }
 0x16a   : > { %350 = vmax.xlane.f32.xlu1 %v349_v44  ;;  %347 = vmax.xlane.f32.xlu2 %v346_v47  ;;  %v215_v44 = vsel %vm91_vm5, %v1205_v40, 0.0  ;;  %v153_v47 = vsub.f32 %v1494_v37, %v1542_v58  ;;  %v320_v37 = vsel %vm1627_vm7, %v1488_v35, -1e+30 }
 0x16b   : > { %207 = vadd.xlane.f32.xlu0 %v206_v43  ;;  %v373_v43 = vsel %vm91_vm5, %v327_v38, -inf }
 0x16c   : > { %v182_v30 = vmul.f32 1.442695, %v153_v47 }
 0x16d   : > { %v1207_v29 = vpop.eup %1206 }
 0x16e   : > { %v224_v60 = vsel %vm91_vm5, %v1207_v29, 0.0  ;;  %1208 = vpow2.f32 %v182_v30 }
 0x172   : > { %359 = vmax.xlane.f32.xlu1 %v358_v1  ;;  %356 = vmax.xlane.f32.xlu2 %v355_v6  ;;  %v343_v1 = vsel %vm91_vm5, %v317_v62, -inf  ;;  %v352_v6 = vsel %vm91_vm5, %v320_v37, -inf }
 0x173   : > { %210 = vadd.xlane.f32.xlu0 %v209_v9  ;;  %v323_v9 = vsel %vm1627_vm7, %v1503_v41, -1e+30  ;;  %vm635_vm7 = vcmask 59393  }
 0x174   : > { %v1209_v46 = vpop.eup %1208  ;;  %v361_v10 = vsel %vm91_vm5, %v323_v9, -inf }
 0x175   : > { %v227_v19 = vsel %vm91_vm5, %v1209_v46, 0.0 }
 0x17a   : > { %365 = vmax.xlane.f32.xlu2 %v364_v27  ;;  %368 = vmax.xlane.f32.xlu1 %v367_v39 }
 0x17b   : > { %213 = vadd.xlane.f32.xlu0 %v212_v31 }
 0x182   : > { %374 = vmax.xlane.f32.xlu2 %v373_v43 }
 0x183   : > { %216 = vadd.xlane.f32.xlu0 %v215_v44 }
 0x18b   : > { %225 = vadd.xlane.f32.xlu0 %v224_v60 }
 0x193   : > { %228 = vadd.xlane.f32.xlu0 %v227_v19 }
 0x19b   : > { %344 = vmax.xlane.f32.xlu0 %v343_v1 }
 0x1a3   : > { %353 = vmax.xlane.f32.xlu0 %v352_v6 }
 0x1ab   : > { %362 = vmax.xlane.f32.xlu0 %v361_v10 }
 0x1b3   : > { %371 = vmax.xlane.f32.xlu0 %v370_v21 }
 0x1b5   : > { %v330_v26 = vpop.xlane.xlu2 %329  ;;  %v333_v19 = vpop.xlane.xlu1 %332 }
 0x1b6   : > { %v339_v27 = vpop.xlane.xlu0 %338 }
 0x1bd   : > { %v336_v31 = vpop.xlane.xlu2 %335 }
 0x1be   : > { %v190_v32 = vpop.xlane.xlu0 %189 }
 0x1bf   : > { %1210 = vlog2.f32 %v190_v32 }
 0x1c5   : > { %v1211_v34 = vpop.eup %1210  ;;  %v199_v39 = vpop.xlane.xlu2 %198 }
 0x1c6   : > { %v237_v38 = vmul.f32 0.6931472, %v1211_v34  ;;  %v193_v40 = vpop.xlane.xlu0 %192 }
 0x1c7   : > { %1212 = vlog2.f32 %v193_v40 }
 0x1c8   : > { %v268_v43 = vadd.f32 %v237_v38, %v1528_v51  ;;  %1214 = vlog2.f32 %v199_v39 }
 0x1ca   : > { %v284_v48 = vsub.f32 %v1446_v18, %v268_v43  ;;  %v379_v6 = vsub.f32 %v330_v26, %v268_v43  ;;  %v1361_v43 = vmov 1.0  }
 0x1cb   : > { %1133 = vmatpush.msk.msra.mxu0 %vm38_vm2, %v1361_v43  ;;  %1136 = vmatpush.msk.msra.mxu1 %vm1394_vm1, %v1361_v43 }
 0x1cc   : > { %541 = vperm.xlu2 %1176, %v284_v48   ;;  %1138 = vmatpush.msk.msra.mxu2 %vm1394_vm1, %v1361_v43 }
 0x1cd   : > { %v1213_v45 = vpop.eup %1212  ;;  %v220_v39 = vpop.xlane.xlu2 %219  ;;  %1140 = vmatpush.msk.msra.mxu3 %vm1394_vm1, %v1361_v43  ;;  %1142 = vmatpush.msk.msrb.mxu1 %vm1394_vm1, %v1361_v43 }
 0x1ce   : > { %v196_v44 = vpop.xlane.xlu0 %195  ;;  %v1215_v47 = vpop.eup %1214  ;;  %v239_v29 = vmul.f32 0.6931472, %v1213_v45  ;;  %1144 = vmatpush.msk.msrb.mxu2 %vm1394_vm1, %v1361_v43  ;;  %1148 = vmatpush.msk.msrb.mxu0 %vm1394_vm1, %v1361_v43 }
 0x1cf   : > { %1216 = vlog2.f32 %v196_v44  ;;  %v243_v60 = vmul.f32 0.6931472, %v1215_v47  ;;  %1146 = vmatpush.msk.msrb.mxu3 %vm1394_vm1, %v1361_v43 }
 0x1d0   : > { %v269_v30 = vadd.f32 %v239_v29, %v1534_v54 }
 0x1d1   : > { %v1683_v51 = vadd.f32 %v243_v60, %v1526_v50 }
 0x1d2   : > { %v285_v46 = vsub.f32 %v1461_v24, %v269_v30  ;;  %v380_v1 = vsub.f32 %v333_v19, %v269_v30  ;;  %v416_v24 = vperm.slane %v379_v6, %v1390_v3 }
 0x1d3   : > { %v382_v10 = vsub.f32 %v339_v27, %v1683_v51  ;;  %v1696_v27 = vpop.xlane.xlu1 %341 }
 0x1d4   : > { %617 = vperm.xlu2 %1176, %v285_v46   ;;  %v417_v17 = vperm.slane %v380_v1, %v1390_v3 }
 0x1d5   : > { %v1217_v62 = vpop.eup %1216  ;;  %v419_v50 = vperm.slane %v382_v10, %v1390_v3  ;;  %v1728_v30 = vpop.xlane.xlu2 %234 }
 0x1d6   : > { %v205_v37 = vpop.xlane.xlu0 %204  ;;  %v241_v18 = vmul.f32 0.6931472, %v1217_v62  ;;  %v433_v21 = vsel %vm432_vm8, %v417_v17, %v416_v24 }
 0x1d8   : > { %v270_v9 = vadd.f32 %v241_v18, %v1524_v49 }
 0x1da   : > { %v381_v54 = vsub.f32 %v336_v31, %v270_v9  ;;  %v286_v62 = vsub.f32 %v1441_v16, %v270_v9 }
 0x1db   : > { %v202_v31 = vpop.xlane.xlu1 %201 }
 0x1dc   : > { %v418_v5 = vperm.slane %v381_v54, %v1390_v3 }
 0x1dd   : > { %v348_v17 = vpop.xlane.xlu2 %347 }
 0x1de   : > { %v208_v32 = vpop.xlane.xlu0 %207  ;;  %v435_v26 = vsel %vm434_vm9, %v418_v5, %v433_v21 }
 0x1df   : > { %v1694_v49 = vsel %vm436_vm10, %v419_v50, %v435_v26 }
 0x1e3   : > { %v223_v48 = vpop.xlane.xlu1 %222 }
 0x1e6   : > { %v211_v34 = vpop.xlane.xlu0 %210 }
 0x1eb   : > { %v232_v10 = vpop.xlane.xlu1 %231 }
 0x1ee   : > { %v214_v38 = vpop.xlane.xlu0 %213 }
 0x1ef   : > { %1218 = vlog2.f32 %v214_v38 }
 0x1f0   : > { %1220 = vlog2.f32 %v223_v48 }
 0x1f1   : > { %1222 = vlog2.f32 %v202_v31 }
 0x1f2   : > { %1224 = vlog2.f32 %v208_v32 }
 0x1f3   : > { %1226 = vlog2.f32 %v211_v34 }
 0x1f4   : > { %1228 = vlog2.f32 %v205_v37 }
 0x1f5   : > { %v1219_v40 = vpop.eup %1218 }
 0x1f6   : > { %v253_v45 = vmul.f32 0.6931472, %v1219_v40  ;;  %v217_v44 = vpop.xlane.xlu0 %216  ;;  %v1221_v60 = vpop.eup %1220 }
 0x1f7   : > { %v1223_v46 = vpop.eup %1222  ;;  %v259_v19 = vmul.f32 0.6931472, %v1221_v60  ;;  %1230 = vlog2.f32 %v217_v44 }
 0x1f8   : > { %v1718_v47 = vadd.f32 %v253_v45, %v1544_v59  ;;  %v1225_v1 = vpop.eup %1224  ;;  %v245_v6 = vmul.f32 0.6931472, %v1223_v46  ;;  %1232 = vlog2.f32 %v220_v39  ;;  %v287_v39 = vsub.f32 %v1458_v23, %v1683_v51 }
 0x1f9   : > { %v1227_v18 = vpop.eup %1226  ;;  %v1732_v54 = vadd.f32 %v259_v19, %v1570_v20  ;;  %v249_v24 = vmul.f32 0.6931472, %v1225_v1 }
 0x1fa   : > { %v292_v29 = vsub.f32 %v1488_v35, %v1718_v47  ;;  %v1229_v35 = vpop.eup %1228  ;;  %v251_v50 = vmul.f32 0.6931472, %v1227_v18  ;;  %v1735_v21 = vadd.f32 %v245_v6, %v1532_v53  ;;  %v376_v53 = vsel %vm55_vm4, 1, %v1359_v22 }
 0x1fb   : > { %v247_v37 = vmul.f32 0.6931472, %v1229_v35  ;;  %v1738_v16 = vadd.f32 %v249_v24, %v1540_v57  ;;  %v295_v9 = vsub.f32 %v1503_v41, %v1732_v54  ;;  %v351_v57 = vpop.xlane.xlu1 %350  ;;  %v396_v40 = vperm.slane %v376_v53, 0 }
 0x1fc   : > { %544 = vperm.xlu0 %1175, %v292_v29   ;;  %v1743_v32 = vadd.f32 %v251_v50, %v1530_v52  ;;  %v383_v20 = vsub.f32 %v1696_v27, %v1735_v21  ;;  %v357_v52 = vpop.xlane.xlu2 %356 }
 0x1fd   : > { %v1752_v26 = vadd.f32 %v247_v37, %v1538_v56  ;;  %v385_v34 = vsub.f32 %v348_v17, %v1738_v16  ;;  %v1231_v31 = vpop.eup %1230  ;;  %vm398_vm15 = vcmp.eq.s32.totalorder %v396_v40, 1 }
 0x1fe   : > { %v226_v59 = vpop.xlane.xlu0 %225  ;;  %v386_v38 = vsub.f32 %v351_v57, %v1743_v32  ;;  %v420_v48 = vperm.slane %v383_v20, %v1390_v3  ;;  %v255_v44 = vmul.f32 0.6931472, %v1231_v31  ;;  %v377_v20 = vrot.slane %v376_v53, 1 }
 0x1ff   : > { %1234 = vlog2.f32 %v226_v59  ;;  %v422_v45 = vperm.slane %v385_v34, %v1390_v3  ;;  %v1233_v59 = vpop.eup %1232 }
 0x200   : > { %v439_v29 = vsel %vm438_vm11, %v420_v48, %v1694_v49  ;;  %v423_v60 = vperm.slane %v386_v38, %v1390_v3  ;;  %v257_v18 = vmul.f32 0.6931472, %v1233_v59  ;;  %vm378_vm5 = vcmp.ne.s32.totalorder %v377_v20, 0 }
 0x202   : > { %v1776_v37 = vadd.f32 %v257_v18, %v1536_v55 }
 0x203   : > { %v360_v35 = vpop.xlane.xlu1 %359 }
 0x204   : > { %691 = vperm.xlu0 %1175, %v286_v62   ;;  %v1769_v62 = vadd.f32 %v255_v44, %v1548_v61  ;;  %v366_v24 = vpop.xlane.xlu2 %365 }
 0x205   : > { %v1235_v51 = vpop.eup %1234 }
 0x206   : > { %v229_v5 = vpop.xlane.xlu0 %228  ;;  %v388_v50 = vsub.f32 %v357_v52, %v1769_v62 }
 0x207   : > { %1236 = vlog2.f32 %v229_v5  ;;  %v261_v5 = vmul.f32 0.6931472, %v1235_v51 }
 0x208   : > { %1238 = vlog2.f32 %v1728_v30  ;;  %v389_v30 = vsub.f32 %v360_v35, %v1776_v37  ;;  %v425_v34 = vperm.slane %v388_v50, %v1390_v3 }
 0x209   : > { %1240 = vlog2.f32 %v232_v10  ;;  %v1781_v10 = vadd.f32 %v261_v5, %v1575_v28 }
 0x20b   : > { %v391_v40 = vsub.f32 %v366_v24, %v1781_v10  ;;  %v369_v28 = vpop.xlane.xlu1 %368  ;;  %v487_v24 = vld [vmem:[#allocation2] sm:$0x3] }
 0x20c   : > { %769 = vperm.xlu0 %1175, %v295_v9  }
 0x20d   : > { %v1237_v17 = vpop.eup %1236 }
 0x20e   : > { %v345_v41 = vpop.xlane.xlu0 %344  ;;  %v263_v61 = vmul.f32 0.6931472, %v1237_v17  ;;  %v1239_v57 = vpop.eup %1238 }
 0x20f   : > { %v384_v27 = vsub.f32 %v345_v41, %v1752_v26  ;;  %v267_v52 = vmul.f32 0.6931472, %v1239_v57 }
 0x210   : > { %v1786_v55 = vadd.f32 %v263_v61, %v1542_v58 }
 0x211   : > { %v421_v56 = vperm.slane %v384_v27, %v1390_v3  ;;  %v426_v27 = vperm.slane %v389_v30, %v1390_v3 }
 0x212   : > { %v392_v58 = vsub.f32 %v369_v28, %v1786_v55 }
 0x213   : > { %v441_v46 = vsel %vm440_vm12, %v421_v56, %v439_v29  ;;  %v375_v56 = vpop.xlane.xlu2 %374  ;;  %v428_v29 = vperm.slane %v391_v40, %v1390_v3 }
 0x214   : > { %766 = vperm.xlu0 %1175, %v287_v39   ;;  %v443_v19 = vsel %vm442_vm13, %v422_v45, %v441_v46  ;;  %v1795_v45 = vadd.f32 %v267_v52, %v1594_v0  ;;  %v429_v0 = vperm.slane %v392_v58, %v1390_v3 }
 0x215   : > { %v445_v23 = vsel %vm444_vm14, %v423_v60, %v443_v19 }
 0x216   : > { %v354_v1 = vpop.xlane.xlu0 %353  ;;  %v455_v49 = vsel %vm398_vm15, %v445_v23, 0.0  ;;  %v394_v46 = vsub.f32 %v375_v56, %v1795_v45 }
 0x217   : > { %1134 = vmatmul.msk.f32.vlgmr.msra.gmra.mxu0 %vm457_vm3, %v455_v49  ;;  %v387_v6 = vsub.f32 %v354_v1, %v1718_v47  ;;  %v1241_v47 = vpop.eup %1240 }
 0x218   : > { %v265_v53 = vmul.f32 0.6931472, %v1241_v47  ;;  %v431_v1 = vperm.slane %v394_v46, %v1390_v3 }
 0x219   : > { %v424_v9 = vperm.slane %v387_v6, %v1390_v3 }
 0x21a   : > { %v1801_v60 = vadd.f32 %v265_v53, %v1592_v63 }
 0x21b   : > { %v446_v38 = vsel %vm432_vm8, %v425_v34, %v424_v9 }
 0x21c   : > { %v447_v39 = vsel %vm434_vm9, %v426_v27, %v446_v38 }
 0x21e   : > { %v363_v41 = vpop.xlane.xlu0 %362 }
 0x21f   : > { %v390_v31 = vsub.f32 %v363_v41, %v1732_v54  ;;  %v395_v54 = vsel %vm378_vm5, 1, %v1359_v22 }
 0x220   : > { %v397_v19 = vperm.slane %v395_v54, 0 }
 0x221   : > { %v427_v48 = vperm.slane %v390_v31, %v1390_v3 }
 0x222   : > { %vm399_vm6 = vcmp.eq.s32.totalorder %v397_v19, 1 }
 0x223   : > { %v448_v44 = vsel %vm436_vm10, %v427_v48, %v447_v39 }
 0x224   : > { %v449_v23 = vsel %vm438_vm11, %v428_v29, %v448_v44 }
 0x225   : > { %v450_v49 = vsel %vm440_vm12, %v429_v0, %v449_v23  ;;  %v293_v0 = vsub.f32 %v1491_v36, %v1769_v62 }
 0x226   : > { %v372_v59 = vpop.xlane.xlu0 %371  ;;  %v542_v53 = vpop.permute.xlu2 %541 }
 0x227   : > { %v393_v22 = vsub.f32 %v372_v59, %v1801_v60  ;;  %v546_v56 = vperm.slane %v542_v53, %v1390_v3 }
 0x229   : > { %v430_v51 = vperm.slane %v393_v22, %v1390_v3 }
 0x22b   : > { %v451_v63 = vsel %vm442_vm13, %v430_v51, %v450_v49  ;;  %v294_v51 = vsub.f32 %v1483_v33, %v1776_v37 }
 0x22c   : > { %v452_v18 = vsel %vm444_vm14, %v431_v1, %v451_v63 }
 0x22d   : > { %v456_v6 = vsel %vm399_vm6, %v452_v18, 0.0 }
 0x22e   : > { %1135 = vmatmul.msk.f32.gmra.mxu0 %vm457_vm3, %v456_v6 }
 0x26e   : > { %v545_v27 = vpop.permute.xlu0 %544 }
 0x26f   : > { %v547_v39 = vperm.slane %v545_v27, %v1390_v3 }
 0x294   : > { %v1813_v17 = vpop.f32.mrf.mxu0 }
 0x295   : > { %v1833_v29 = vrot.slane %v1813_v17, 1 }
 0x2ab   : > { %v1815_v35 = vpop.f32.mrf.mxu0 }
 0x2ac   : > { %v490_v5 = vrot.slane %v1815_v35, 7 }
 0x2ae   : > { %v491_v50 = vsel %vm432_vm8, %v490_v5, %v1813_v17 }
 0x2af   : > { %v493_v61 = vsub.f32 %v487_v24, %v491_v50 }
 0x2b1   : > { %v495_v9 = vsel %vm64_vm0, %v493_v61, -inf }
 0x2b2   : > { %496 = vmax.xlane.f32.xlu1 %v495_v9 }
 0x325   : > { %v497_v20 = vpop.xlane.xlu1 %496 }
 0x326   : > { %v498_v57 = vsub.f32 %v493_v61, %v497_v20  ;;  %v525_v41 = vrot.slane %v497_v20, 1  ;;  %v528_v52 = vadd.f32 %v497_v20, %v1813_v17 }
 0x328   : > { %v499_v30 = vmul.f32 1.442695, %v498_v57  ;;  %v529_v40 = vadd.f32 %v525_v41, %v1815_v35 }
 0x32a   : > { %1242 = vpow2.f32 %v499_v30  ;;  %v618_v30 = vpop.permute.xlu2 %617 }
 0x330   : > { %v1243_v47 = vpop.eup %1242 }
 0x331   : > { %1137 = vmatmul.msk.f32.vlgmr.msra.gmra.mxu1 %vm457_vm3, %v1243_v47 }
 0x332   : > { %1150 = vmatpush.msk.msra.mxu1 %vm1394_vm1, %v1361_v43  ;;  %v1830_v43 = vrot.slane %v1815_v35, 1 }
 0x3ae   : > { %v521_v34 = vpop.f32.mrf.mxu1 }
 0x3af   : > { %1244 = vlog2.f32 %v521_v34 }
 0x3b5   : > { %v1245_v31 = vpop.eup %1244 }
 0x3b6   : > { %v531_v38 = vmul.f32 0.6931472, %v1245_v31 }
 0x3b8   : > { %v533_v28 = vrot.slane %v531_v38, 1  ;;  %v536_v48 = vadd.f32 %v531_v38, %v528_v52  ;;  %v622_v52 = vperm.slane %v618_v30, %v1390_v3 }
 0x3ba   : > { %v537_v54 = vadd.f32 %v533_v28, %v529_v40  ;;  %v550_v58 = vadd.f32 %v546_v56, %v536_v48 }
 0x3bc   : > { %v551_v44 = vadd.f32 %v547_v39, %v537_v54  ;;  %v556_v59 = vsub.f32 %v550_v58, %v1833_v29  ;;  %v296_v54 = vsub.f32 %v1506_v42, %v1781_v10 }
 0x3be   : > { %v557_v46 = vsub.f32 %v551_v44, %v1830_v43 }
 0x3c0   : > { %v560_v19 = vrot.slane %v557_v46, 7 }
 0x3c2   : > { %v561_v23 = vsel %vm432_vm8, %v560_v19, %v556_v59 }
 0x3c3   : > { %v563_v22 = vsel %vm64_vm0, %v561_v23, -inf }
 0x3c4   : > { %564 = vmax.xlane.f32.xlu1 %v563_v22 }
 0x3dd   : > { %620 = vperm.xlu1 %1177, %v293_v0  }
 0x3e5   : > { %694 = vperm.xlu1 %1177, %v294_v51  }
 0x437   : > { %v565_v1 = vpop.xlane.xlu1 %564 }
 0x438   : > { %v567_v49 = vrot.slane %v565_v1, 1  ;;  %v570_v63 = vsub.f32 %v556_v59, %v565_v1  ;;  %v602_v62 = vrot.slane %v565_v1, 7  ;;  %v605_v20 = vadd.f32 %v565_v1, %v1815_v35 }
 0x43a   : > { %v571_v18 = vsub.f32 %v557_v46, %v567_v49  ;;  %v572_v6 = vmul.f32 1.442695, %v570_v63  ;;  %v604_v47 = vadd.f32 %v602_v62, %v1813_v17 }
 0x43c   : > { %v574_v24 = vmul.f32 1.442695, %v571_v18  ;;  %v692_v18 = vpop.permute.xlu0 %691 }
 0x43e   : > { %1246 = vpow2.f32 %v574_v24 }
 0x43f   : > { %1248 = vpow2.f32 %v572_v6 }
 0x444   : > { %v1247_v5 = vpop.eup %1246 }
 0x445   : > { %v578_v50 = vrot.slane %v1247_v5, 7  ;;  %v1249_v61 = vpop.eup %1248 }
 0x447   : > { %v579_v9 = vsel %vm432_vm8, %v578_v50, %v1249_v61 }
 0x448   : > { %1139 = vmatmul.msk.f32.vlgmr.msra.gmra.mxu2 %vm457_vm3, %v579_v9  ;;  %v696_v9 = vperm.slane %v692_v18, %v1390_v3 }
 0x44f   : > { %v621_v37 = vpop.permute.xlu1 %620 }
 0x450   : > { %v623_v34 = vperm.slane %v621_v37, %v1390_v3 }
 0x457   : > { %v695_v6 = vpop.permute.xlu1 %694 }
 0x4cb   : > { %v599_v36 = vpop.f32.mrf.mxu2 }
 0x4cc   : > { %1250 = vlog2.f32 %v599_v36  ;;  %v697_v36 = vperm.slane %v695_v6, %v1390_v3 }
 0x4d2   : > { %v1251_v33 = vpop.eup %1250 }
 0x4d3   : > { %v607_v57 = vmul.f32 0.6931472, %v1251_v33 }
 0x4d5   : > { %v609_v41 = vrot.slane %v607_v57, 7  ;;  %v613_v31 = vadd.f32 %v607_v57, %v605_v20 }
 0x4d7   : > { %v612_v38 = vadd.f32 %v609_v41, %v604_v47  ;;  %v627_v53 = vadd.f32 %v623_v34, %v613_v31  ;;  %v1288_v31 = vld [vmem:[%s1438_s26 + $0x20] sm:$0xff] }
 0x4d9   : > { %v626_v27 = vadd.f32 %v622_v52, %v612_v38  ;;  %v629_v40 = vsub.f32 %v627_v53, %v1830_v43  ;;  %v288_v52 = vsub.f32 %v1288_v31, %v1735_v21  ;;  %v289_v38 = vsub.f32 %v1464_v25, %v1752_v26  ;;  %v770_v21 = vpop.permute.xlu0 %769 }
 0x4db   : > { %v628_v28 = vsub.f32 %v626_v27, %v1833_v29  ;;  %v632_v48 = vrot.slane %v629_v40, 7 }
 0x4dd   : > { %v633_v56 = vsel %vm434_vm9, %v632_v48, %v628_v28  ;;  %vm709_vm9 = vcmask 60418  }
 0x4de   : > { %v636_v39 = vsel %vm635_vm7, %v633_v56, -inf }
 0x4df   : > { %637 = vmax.xlane.f32.xlu2 %v636_v39 }
 0x4f7   : > { %844 = vperm.xlu2 %1176, %v296_v54  }
 0x552   : > { %v638_v58 = vpop.xlane.xlu2 %637 }
 0x553   : > { %v640_v44 = vrot.slane %v638_v58, 1  ;;  %v643_v46 = vsub.f32 %v628_v28, %v638_v58  ;;  %v675_v63 = vrot.slane %v638_v58, 7  ;;  %v678_v5 = vadd.f32 %v638_v58, %v1815_v35 }
 0x555   : > { %v644_v59 = vsub.f32 %v629_v40, %v640_v44  ;;  %v645_v19 = vmul.f32 1.442695, %v643_v46  ;;  %v677_v24 = vadd.f32 %v675_v63, %v1813_v17 }
 0x557   : > { %1252 = vpow2.f32 %v645_v19  ;;  %v647_v23 = vmul.f32 1.442695, %v644_v59 }
 0x559   : > { %1254 = vpow2.f32 %v647_v23  ;;  %v767_v23 = vpop.permute.xlu0 %766 }
 0x55a   : > { %v771_v63 = vperm.slane %v767_v23, %v1390_v3 }
 0x55d   : > { %v1253_v22 = vpop.eup %1252 }
 0x55e   : > { %v651_v0 = vrot.slane %v1253_v22, 1 }
 0x55f   : > { %v1255_v51 = vpop.eup %1254 }
 0x560   : > { %v652_v1 = vsel %vm432_vm8, %v1255_v51, %v651_v0 }
 0x561   : > { %1141 = vmatmul.msk.f32.vlgmr.msra.gmra.mxu3 %vm457_vm3, %v652_v1 }
 0x5e4   : > { %v672_v49 = vpop.f32.mrf.mxu3 }
 0x5e5   : > { %1256 = vlog2.f32 %v672_v49  ;;  %v772_v49 = vperm.slane %v770_v21, %v1390_v3 }
 0x5eb   : > { %v1257_v42 = vpop.eup %1256 }
 0x5ec   : > { %v680_v10 = vmul.f32 0.6931472, %v1257_v42 }
 0x5ee   : > { %v682_v50 = vrot.slane %v680_v10, 6  ;;  %v683_v61 = vrot.slane %v680_v10, 7 }
 0x5f0   : > { %v686_v62 = vadd.f32 %v682_v50, %v677_v24  ;;  %v687_v33 = vadd.f32 %v683_v61, %v678_v5 }
 0x5f2   : > { %v701_v37 = vadd.f32 %v697_v36, %v687_v33  ;;  %v700_v20 = vadd.f32 %v696_v9, %v686_v62  ;;  %v1289_v36 = vld [vmem:[%s1438_s26 + $0xa8] sm:$0xff]  ;;  %v1290_v33 = vld [vmem:[%s1438_s26 + $0xb0] sm:$0xff] }
 0x5f3   : > { %v297_v62 = vsub.f32 %v1289_v36, %v1786_v55 }
 0x5f4   : > { %v703_v57 = vsub.f32 %v701_v37, %v1830_v43  ;;  %v702_v30 = vsub.f32 %v700_v20, %v1833_v29  ;;  %v298_v37 = vsub.f32 %v1290_v33, %v1801_v60  ;;  %v1291_v20 = vld [vmem:[%s1438_s26 + $0x30] sm:$0xff] }
 0x5f6   : > { %v706_v47 = vrot.slane %v703_v57, 7 }
 0x5f8   : > { %v707_v34 = vsel %vm436_vm10, %v706_v47, %v702_v30  ;;  %vm784_vm10 = vcmask 61443  }
 0x5f9   : > { %v710_v41 = vsel %vm709_vm9, %v707_v34, -inf }
 0x5fa   : > { %711 = vmax.xlane.f32.xlu1 %v710_v41 }
 0x613   : > { %841 = vperm.xlu1 %1177, %v288_v52  }
 0x61b   : > { %916 = vperm.xlu1 %1177, %v289_v38  }
 0x66d   : > { %v712_v53 = vpop.xlane.xlu1 %711 }
 0x66e   : > { %v714_v27 = vrot.slane %v712_v53, 1  ;;  %v717_v40 = vsub.f32 %v702_v30, %v712_v53  ;;  %v750_v25 = vrot.slane %v712_v53, 7  ;;  %v753_v0 = vadd.f32 %v712_v53, %v1815_v35  ;;  %v1292_v30 = vld [vmem:[%s1438_s26 + $0xb8] sm:$0xff] }
 0x66f   : > { %v299_v47 = vsub.f32 %v1292_v30, %v1795_v45 }
 0x670   : > { %v718_v28 = vsub.f32 %v703_v57, %v714_v27  ;;  %v719_v48 = vmul.f32 1.442695, %v717_v40  ;;  %v752_v22 = vadd.f32 %v750_v25, %v1813_v17  ;;  %v290_v57 = vsub.f32 %v1291_v20, %v1738_v16 }
 0x672   : > { %1258 = vpow2.f32 %v719_v48  ;;  %v721_v56 = vmul.f32 1.442695, %v718_v28 }
 0x674   : > { %1260 = vpow2.f32 %v721_v56 }
 0x678   : > { %v1259_v39 = vpop.eup %1258 }
 0x679   : > { %v725_v58 = vrot.slane %v1259_v39, 2  ;;  %v845_v39 = vpop.permute.xlu2 %844 }
 0x67a   : > { %v1261_v54 = vpop.eup %1260 }
 0x67b   : > { %v726_v44 = vrot.slane %v1261_v54, 1 }
 0x67d   : > { %v727_v46 = vsel %vm432_vm8, %v726_v44, %v725_v58 }
 0x67e   : > { %1143 = vmatmul.msk.f32.vlgmr.msrb.gmra.mxu1 %vm457_vm3, %v727_v46 }
 0x685   : > { %v842_v54 = vpop.permute.xlu1 %841 }
 0x686   : > { %v846_v25 = vperm.slane %v842_v54, %v1390_v3 }
 0x68d   : > { %v917_v30 = vpop.permute.xlu1 %916 }
 0x6fb   : > { %v747_v59 = vpop.f32.mrf.mxu1 }
 0x6fc   : > { %1262 = vlog2.f32 %v747_v59  ;;  %v847_v59 = vperm.slane %v845_v39, %v1390_v3 }
 0x702   : > { %v1263_v26 = vpop.eup %1262 }
 0x703   : > { %v755_v19 = vmul.f32 0.6931472, %v1263_v26 }
 0x705   : > { %v757_v51 = vrot.slane %v755_v19, 5  ;;  %v758_v1 = vrot.slane %v755_v19, 6 }
 0x707   : > { %v761_v42 = vadd.f32 %v757_v51, %v752_v22  ;;  %v762_v10 = vadd.f32 %v758_v1, %v753_v0 }
 0x709   : > { %v776_v18 = vadd.f32 %v772_v49, %v762_v10  ;;  %v775_v6 = vadd.f32 %v771_v63, %v761_v42 }
 0x70b   : > { %v778_v24 = vsub.f32 %v776_v18, %v1830_v43  ;;  %v777_v5 = vsub.f32 %v775_v6, %v1833_v29 }
 0x70d   : > { %v781_v50 = vrot.slane %v778_v24, 7 }
 0x70f   : > { %v782_v61 = vsel %vm438_vm11, %v781_v50, %v777_v5  ;;  %vm859_vm11 = vcmask 62468  }
 0x710   : > { %v785_v9 = vsel %vm784_vm10, %v782_v61, -inf }
 0x711   : > { %786 = vmax.xlane.f32.xlu0 %v785_v9 }
 0x725   : > { %919 = vperm.xlu0 %1175, %v297_v62  }
 0x72d   : > { %994 = vperm.xlu0 %1175, %v298_v37  }
 0x735   : > { %991 = vperm.xlu0 %1175, %v290_v57  }
 0x73d   : > { %1069 = vperm.xlu0 %1175, %v299_v47  }
 0x784   : > { %v787_v34 = vpop.xlane.xlu0 %786 }
 0x785   : > { %v789_v41 = vrot.slane %v787_v34, 1  ;;  %v792_v31 = vsub.f32 %v777_v5, %v787_v34  ;;  %v825_v45 = vrot.slane %v787_v34, 7  ;;  %v828_v58 = vadd.f32 %v787_v34, %v1815_v35 }
 0x787   : > { %v793_v52 = vsub.f32 %v778_v24, %v789_v41  ;;  %v794_v38 = vmul.f32 1.442695, %v792_v31  ;;  %v827_v44 = vadd.f32 %v825_v45, %v1813_v17 }
 0x789   : > { %1264 = vpow2.f32 %v794_v38  ;;  %v796_v55 = vmul.f32 1.442695, %v793_v52  ;;  %v921_v38 = vperm.slane %v917_v30, %v1390_v3  ;;  %v1293_v30 = vld [vmem:[%s1438_s26 + $0x38] sm:$0xff] }
 0x78b   : > { %1266 = vpow2.f32 %v796_v55 }
 0x78f   : > { %v1265_v53 = vpop.eup %1264 }
 0x790   : > { %v800_v60 = vrot.slane %v1265_v53, 3 }
 0x791   : > { %v1267_v27 = vpop.eup %1266 }
 0x792   : > { %v801_v40 = vrot.slane %v1267_v27, 2 }
 0x794   : > { %v802_v28 = vsel %vm432_vm8, %v801_v40, %v800_v60 }
 0x795   : > { %1145 = vmatmul.msk.f32.vlgmr.msrb.gmra.mxu2 %vm457_vm3, %v802_v28 }
 0x797   : > { %v920_v47 = vpop.permute.xlu0 %919 }
 0x798   : > { %v922_v55 = vperm.slane %v920_v47, %v1390_v3  ;;  %v291_v47 = vsub.f32 %v1293_v30, %v1743_v32 }
 0x818   : > { %v822_v16 = vpop.f32.mrf.mxu2 }
 0x819   : > { %1268 = vlog2.f32 %v822_v16 }
 0x81f   : > { %v1269_v48 = vpop.eup %1268 }
 0x820   : > { %v830_v56 = vmul.f32 0.6931472, %v1269_v48 }
 0x822   : > { %v832_v46 = vrot.slane %v830_v56, 4  ;;  %v833_v21 = vrot.slane %v830_v56, 5 }
 0x824   : > { %v836_v26 = vadd.f32 %v832_v46, %v827_v44  ;;  %v837_v19 = vadd.f32 %v833_v21, %v828_v58 }
 0x826   : > { %v850_v23 = vadd.f32 %v846_v25, %v836_v26  ;;  %v851_v22 = vadd.f32 %v847_v59, %v837_v19 }
 0x828   : > { %v853_v0 = vsub.f32 %v851_v22, %v1830_v43  ;;  %v852_v51 = vsub.f32 %v850_v23, %v1833_v29  ;;  %v995_v22 = vpop.permute.xlu0 %994 }
 0x82a   : > { %v856_v1 = vrot.slane %v853_v0, 7 }
 0x82c   : > { %v857_v49 = vsel %vm440_vm12, %v856_v1, %v852_v51  ;;  %vm934_vm12 = vcmask 63493  }
 0x82d   : > { %v860_v63 = vsel %vm859_vm11, %v857_v49, -inf }
 0x82e   : > { %861 = vmax.xlane.f32.xlu2 %v860_v63 }
 0x830   : > { %v992_v63 = vpop.permute.xlu0 %991 }
 0x8a1   : > { %v862_v42 = vpop.xlane.xlu2 %861 }
 0x8a2   : > { %v864_v10 = vrot.slane %v862_v42, 1  ;;  %v867_v18 = vsub.f32 %v852_v51, %v862_v42  ;;  %v900_v37 = vrot.slane %v862_v42, 7  ;;  %v903_v34 = vadd.f32 %v862_v42, %v1815_v35 }
 0x8a4   : > { %v868_v6 = vsub.f32 %v853_v0, %v864_v10  ;;  %v869_v24 = vmul.f32 1.442695, %v867_v18  ;;  %v902_v41 = vadd.f32 %v900_v37, %v1813_v17 }
 0x8a6   : > { %1270 = vpow2.f32 %v869_v24  ;;  %v871_v5 = vmul.f32 1.442695, %v868_v6  ;;  %v997_v24 = vperm.slane %v995_v22, %v1390_v3 }
 0x8a8   : > { %1272 = vpow2.f32 %v871_v5  ;;  %v996_v5 = vperm.slane %v992_v63, %v1390_v3 }
 0x8ac   : > { %v1271_v50 = vpop.eup %1270 }
 0x8ad   : > { %v875_v9 = vrot.slane %v1271_v50, 4 }
 0x8ae   : > { %v1273_v61 = vpop.eup %1272 }
 0x8af   : > { %v876_v36 = vrot.slane %v1273_v61, 3 }
 0x8b1   : > { %v877_v62 = vsel %vm432_vm8, %v876_v36, %v875_v9 }
 0x8b2   : > { %1147 = vmatmul.msk.f32.vlgmr.msrb.gmra.mxu3 %vm457_vm3, %v877_v62 }
 0x935   : > { %v897_v33 = vpop.f32.mrf.mxu3 }
 0x936   : > { %1274 = vlog2.f32 %v897_v33 }
 0x93c   : > { %v1275_v20 = vpop.eup %1274 }
 0x93d   : > { %v905_v57 = vmul.f32 0.6931472, %v1275_v20 }
 0x93f   : > { %v907_v31 = vrot.slane %v905_v57, 3  ;;  %v908_v52 = vrot.slane %v905_v57, 4 }
 0x941   : > { %v911_v53 = vadd.f32 %v907_v31, %v902_v41  ;;  %v912_v27 = vadd.f32 %v908_v52, %v903_v34 }
 0x943   : > { %v925_v60 = vadd.f32 %v921_v38, %v911_v53  ;;  %v926_v40 = vadd.f32 %v922_v55, %v912_v27 }
 0x945   : > { %v928_v28 = vsub.f32 %v926_v40, %v1830_v43  ;;  %v927_v16 = vsub.f32 %v925_v60, %v1833_v29 }
 0x947   : > { %v931_v45 = vrot.slane %v928_v28, 7 }
 0x949   : > { %v932_v48 = vsel %vm442_vm13, %v931_v45, %v927_v16  ;;  %vm1009_vm13 = vcmask 64518   ;;  %v1070_v45 = vpop.permute.xlu0 %1069 }
 0x94a   : > { %v935_v56 = vsel %vm934_vm12, %v932_v48, -inf }
 0x94b   : > { %936 = vmax.xlane.f32.xlu1 %v935_v56 }
 0x9be   : > { %v937_v39 = vpop.xlane.xlu1 %936 }
 0x9bf   : > { %v939_v54 = vrot.slane %v937_v39, 1  ;;  %v942_v58 = vsub.f32 %v927_v16, %v937_v39  ;;  %v975_v51 = vrot.slane %v937_v39, 7  ;;  %v978_v10 = vadd.f32 %v937_v39, %v1815_v35 }
 0x9c1   : > { %v943_v44 = vsub.f32 %v928_v28, %v939_v54  ;;  %v944_v46 = vmul.f32 1.442695, %v942_v58  ;;  %v977_v42 = vadd.f32 %v975_v51, %v1813_v17 }
 0x9c3   : > { %1276 = vpow2.f32 %v944_v46  ;;  %v946_v21 = vmul.f32 1.442695, %v943_v44  ;;  %v1072_v44 = vperm.slane %v1070_v45, %v1390_v3 }
 0x9c5   : > { %1278 = vpow2.f32 %v946_v21 }
 0x9c9   : > { %v1277_v59 = vpop.eup %1276 }
 0x9ca   : > { %v950_v26 = vrot.slane %v1277_v59, 5 }
 0x9cb   : > { %v1279_v25 = vpop.eup %1278 }
 0x9cc   : > { %v951_v19 = vrot.slane %v1279_v25, 4 }
 0x9ce   : > { %v952_v23 = vsel %vm432_vm8, %v951_v19, %v950_v26 }
 0x9cf   : > { %1149 = vmatmul.msk.f32.vlgmr.msrb.gmra.mxu0 %vm457_vm3, %v952_v23  ;;  %v1092_v23 = vld [vmem:[#allocation1] sm:$0xff] (%p68_p0) }
 0x9d0   :  { %vm1093_vm15 = vcmp.eq.s32.totalorder (%p68_p0), %v1390_v3, %v1092_v23 }
 0xa4c   : > { %v972_v0 = vpop.f32.mrf.mxu0 }
 0xa4d   : > { %1280 = vlog2.f32 %v972_v0 }
 0xa53   : > { %v1281_v1 = vpop.eup %1280 }
 0xa54   : > { %v980_v49 = vmul.f32 0.6931472, %v1281_v1 }
 0xa56   : > { %v982_v18 = vrot.slane %v980_v49, 2  ;;  %v983_v6 = vrot.slane %v980_v49, 3 }
 0xa58   : > { %v986_v50 = vadd.f32 %v982_v18, %v977_v42  ;;  %v987_v61 = vadd.f32 %v983_v6, %v978_v10 }
 0xa5a   : > { %v1000_v9 = vadd.f32 %v996_v5, %v986_v50  ;;  %v1001_v36 = vadd.f32 %v997_v24, %v987_v61 }
 0xa5c   : > { %v1003_v62 = vsub.f32 %v1001_v36, %v1830_v43  ;;  %v1002_v33 = vsub.f32 %v1000_v9, %v1833_v29 }
 0xa5e   : > { %v1006_v37 = vrot.slane %v1003_v62, 7 }
 0xa60   : > { %v1007_v20 = vsel %vm444_vm14, %v1006_v37, %v1002_v33  ;;  %vm1084_vm14 = vcmask 57344  }
 0xa61   : > { %v1010_v57 = vsel %vm1009_vm13, %v1007_v20, -inf }
 0xa62   : > { %1011 = vmax.xlane.f32.xlu2 %v1010_v57 }
 0xa7a   : > { %1066 = vperm.xlu2 %1176, %v291_v47  }
 0xad5   : > { %v1012_v34 = vpop.xlane.xlu2 %1011 }
 0xad6   : > { %v1014_v41 = vrot.slane %v1012_v34, 1  ;;  %v1017_v31 = vsub.f32 %v1002_v33, %v1012_v34  ;;  %v1050_v32 = vrot.slane %v1012_v34, 7  ;;  %v1053_v56 = vadd.f32 %v1012_v34, %v1815_v35 }
 0xad8   : > { %v1018_v52 = vsub.f32 %v1003_v62, %v1014_v41  ;;  %v1019_v38 = vmul.f32 1.442695, %v1017_v31  ;;  %v1052_v39 = vadd.f32 %v1050_v32, %v1813_v17 }
 0xada   : > { %1282 = vpow2.f32 %v1019_v38  ;;  %v1021_v55 = vmul.f32 1.442695, %v1018_v52 }
 0xadc   : > { %1284 = vpow2.f32 %v1021_v55 }
 0xadd   : > { %v1067_v48 = vpop.permute.xlu2 %1066 }
 0xade   : > { %v1071_v46 = vperm.slane %v1067_v48, %v1390_v3 }
 0xae0   : > { %v1283_v43 = vpop.eup %1282 }
 0xae1   : > { %v1025_v53 = vrot.slane %v1283_v43, 6 }
 0xae2   : > { %v1285_v29 = vpop.eup %1284 }
 0xae3   : > { %v1026_v27 = vrot.slane %v1285_v29, 5 }
 0xae5   : > { %v1027_v60 = vsel %vm432_vm8, %v1026_v27, %v1025_v53  ;;  %vm1082_vm8 = vcmask 64519  }
 0xae6   : > { %1151 = vmatmul.msk.f32.vlgmr.msra.gmra.mxu1 %vm457_vm3, %v1027_v60 }
 0xb63   : > { %v1047_v40 = vpop.f32.mrf.mxu1 }
 0xb64   : > { %1286 = vlog2.f32 %v1047_v40 }
 0xb6a   : > { %v1287_v28 = vpop.eup %1286 }
 0xb6b   : > { %v1055_v16 = vmul.f32 0.6931472, %v1287_v28 }
 0xb6d   : > { %v1057_v54 = vrot.slane %v1055_v16, 1  ;;  %v1058_v58 = vrot.slane %v1055_v16, 2 }
 0xb6f   : > { %v1061_v21 = vadd.f32 %v1057_v54, %v1052_v39  ;;  %v1062_v59 = vadd.f32 %v1058_v58, %v1053_v56 }
 0xb71   : > { %v1075_v25 = vadd.f32 %v1071_v46, %v1061_v21  ;;  %v1076_v26 = vadd.f32 %v1072_v44, %v1062_v59  ;;  %70 = sbr.rel (!%p68_p0) target bundleno = 143 (0x8f), region = 54 }
 0xb73   : > { %v1079_v19 = vrot.slane %v1076_v26, 7  ;;  %1083 = vst.msk [vmem:[#allocation2 - $0x7] sm:$0x80] %vm1082_vm8, %v1075_v25 }
 0xb75   : > { %1085 = vst.msk [vmem:[#allocation2 + $0x1] sm:$0x1] %vm1084_vm14, %v1079_v19 }
 0xb7c   :  { %v1094_v17 = vld [vmem:[#allocation2] sm:$0x3] }
 0xb7d   :  { %v1095_v35 = vsub.f32 0.0, %v1094_v17 }
 0xb7f   :  { %v1096_v22 = vsel %vm1093_vm15, %v1095_v35, 0.0 }
 0xb80   :  { %1101 = vst.msk [vmem:[#allocation6] sm:$0x1] %vm1084_vm14, %v1096_v22  ;;  %v1098_v2 = vrot.slane %v1096_v22, 1 }
 0xb82   :  { %1102 = vst.msk [vmem:[#allocation6 + $0x1] sm:$0x1] %vm1084_vm14, %v1098_v2 }
 0xb83   :  { %1115 = dma.vmem_to_hbm [thread:$0]  %s1108_s28, 32, %s1110_s4, [#allocation5], %s1363_s5, %s1363_s5, %s1364_s6  }
 0xb84   :  { %1348 = dma.done.wait [#allocation5], 32  }
 0xb85   :  { %1349 = vsyncadd [#allocation5], 4294967264 }
 0xb86   :  { %1120 = vsyncpa [#allocation4], 1 }
 0xb87   :  { %1121 = vsyncpa [#allocation5], 1 }

</bundles_post_ra>
